<compile_context>
chip_gen: v7x
topology: tpu7x:2x2x1
jax: 0.10.0
libtpu: 0.0.40
codegen_flags: <defaults>
</compile_context>

<pallas_src>
import functools

import jax
import jax.numpy as jnp
from jax.experimental import pallas as pl
from jax.experimental.pallas import tpu as pltpu


def _round_up(v, m):
    return (v + m - 1) // m * m


# ----------------------------------------------------------------------------
# Kernels
# ----------------------------------------------------------------------------
def conv_in_lrelu_kernel(x_ref, w_ref, gb_ref, s_ref, st_ref, o_ref, stage_ref,
                         *, wq, rows_p, inv_count):
    """Fused Conv2d(4,2,1) + InstanceNorm2d(affine) + LeakyReLU(0.2).

    One block of output channels x one group of `ns` samples stacked on lanes.
      x_ref    : (1, rows_p, L_in)   bf16  phase-major flattened padded input
      w_ref    : (TCo, 4*rows_p)     bf16  taps; K ordered (offset g, rows)
      gb_ref   : (TCo, 2)            f32   packed (gamma, beta)
      s_ref    : (L_out, ns_p)       f32   per-sample valid-lane indicator
      st_ref   : (ns_p, L_out)       f32   its transpose (sample -> lane bcast)
      o_ref    : (1, TCo, L_out)     bf16  lanes = (sample, hq, wq); junk
                                           rows/cols stripped by the caller
      stage_ref: (4*rows_p, L_out)   bf16  VMEM staging of the fused-K RHS
    """
    l_out = o_ref.shape[2]

    # Stage the 4 spatial-offset slices (a, b) of the phase tensor into one
    # contiguous RHS, then the whole conv is a single MXU matmul (K = 4*rows_p)
    # -> one result drain instead of 4 accumulate passes over the f32 acc.
    for g in range(4):
        a, b = divmod(g, 2)
        off = a * wq + b
        stage_ref[g * rows_p:(g + 1) * rows_p, :] = x_ref[0, :, off:off + l_out]
    acc = jnp.dot(w_ref[...], stage_ref[...],
                  preferred_element_type=jnp.float32)          # (TCo, L_out)

    # InstanceNorm2d statistics, one (mean, var) per (sample, channel).
    # Segment sums over the stacked samples via tiny MXU matmuls with the 0/1
    # indicator S (S also masks junk lanes out of the statistics).
    sums = jnp.dot(acc, s_ref[...], preferred_element_type=jnp.float32)
    mean = sums * inv_count                                    # (TCo, ns_p)
    # Two-pass variance: center first (no E[x^2]-E[x]^2 cancellation).
    cen = acc - jnp.dot(mean, st_ref[...], preferred_element_type=jnp.float32)
    var = jnp.dot(cen * cen, s_ref[...],
                  preferred_element_type=jnp.float32) * inv_count
    var = jnp.maximum(var, 0.0)
    scale = gb_ref[:, 0:1] * jax.lax.rsqrt(var + 1e-5)         # gamma folded in
    # Broadcast the per-(sample, channel) scale back onto the lane axis; beta
    # is per-channel only so it broadcasts directly.
    y = cen * jnp.dot(scale, st_ref[...], preferred_element_type=jnp.float32)
    y = y + gb_ref[:, 1:2]
    y = jnp.where(y >= 0, y, 0.2 * y)                          # LeakyReLU(0.2)
    o_ref[0] = y.astype(o_ref.dtype)


def fc_heads_kernel(y_ref, w1_ref, b1_ref, w2_ref, b2_ref, adv_ref, att_ref,
                    h_acc):
    """Fused adv/att heads: Linear -> LeakyReLU(0.2) -> block-diag Linear
    (-> sigmoid on the att slice).  Grid axis = contraction tiles of y / w1."""
    k = pl.program_id(0)

    @pl.when(k == 0)
    def _init():
        h_acc[...] = jnp.zeros_like(h_acc)

    h_acc[...] += jnp.dot(y_ref[...], w1_ref[...],
                          preferred_element_type=jnp.float32)

    @pl.when(k == pl.num_programs(0) - 1)
    def _finalize():
        h = h_acc[...] + b1_ref[...]
        h = jnp.where(h >= 0, h, 0.2 * h)                      # LeakyReLU(0.2)
        o = jnp.dot(h.astype(jnp.bfloat16), w2_ref[...],
                    preferred_element_type=jnp.float32) + b2_ref[...]
        adv_ref[...] = o[:, :1]
        att_ref[...] = jax.nn.sigmoid(o[:, 1:])


# ----------------------------------------------------------------------------
# Wrappers (glue in plain JAX: padding / phase split / weight regrouping only)
# ----------------------------------------------------------------------------
def conv_in_lrelu(x, w, gamma, beta):
    """x: (N, C_in, H, W), w: (C_out, C_in, 4, 4) -> (N, C_out, H//2, W//2).

    The conv bias is intentionally omitted: InstanceNorm's per-channel mean
    subtraction cancels it exactly.
    """
    n, c_in, h, wd = x.shape
    assert h % 2 == 0 and wd % 2 == 0
    c_out = w.shape[0]
    ho, wo = h // 2, wd // 2
    hq, wq = ho + 1, wo + 1
    l_per = hq * wq                       # lanes per sample (incl. junk row/col)

    # Stack samples on the lane axis until the matmul N dim is >= 256 lanes.
    ns = 1
    for cand in range(1, min(n, 8) + 1):
        if n % cand == 0:
            ns = cand
            if cand * l_per >= 256:
                break
    ngroups = n // ns

    l_blk = ns * l_per
    l_out = _round_up(l_blk, 128)         # 128-aligned lanes -> unmasked stores
    l_in = _round_up(l_out + wq + 2, 128)  # + max spatial-offset slack
    rows_p = _round_up(4 * c_in, 16)      # bf16 sublane-tile aligned rows

    # Pad, split even/odd rows & cols into 4 phases (rows), flatten
    # (sample, hq, wq) onto the lane axis.  A 1x re-layout, not a 16x im2col.
    xp = jnp.pad(x, ((0, 0), (0, 0), (1, 1), (1, 1)))
    xph = xp.reshape(ngroups, ns, c_in, hq, 2, wq, 2)
    xph = xph.transpose(0, 4, 6, 2, 1, 3, 5).reshape(ngroups, 4 * c_in, l_blk)
    xph = jnp.pad(xph, ((0, 0), (0, rows_p - 4 * c_in), (0, l_in - l_blk)))
    xph = xph.astype(jnp.bfloat16)
    # TODO(synk): emit the next layer's padded phase layout straight from the
    # kernel's output to drop the inter-layer pad/transpose HBM round trips.

    # Taps grouped by spatial offset (a, b); fused contraction axis ordered
    # (offset g, phase_a, phase_b, c_in), zero-padded to 4*rows_p.
    wg = w.reshape(c_out, c_in, 2, 2, 2, 2).transpose(2, 4, 0, 3, 5, 1)
    wg = wg.reshape(4, c_out, 4 * c_in)
    wg = jnp.pad(wg, ((0, 0), (0, 0), (0, rows_p - 4 * c_in)))
    wflat = wg.transpose(1, 0, 2).reshape(c_out, 4 * rows_p).astype(jnp.bfloat16)

    gb = jnp.stack([gamma, beta], axis=1).astype(jnp.float32)   # (C_out, 2)

    # Per-sample valid-lane indicator (junk cols/rows + lane padding -> 0).
    # ns is padded to 8 columns so the stats matmuls never see an N/K of 1.
    ns_p = 8
    p = jnp.arange(l_out)
    local = p % l_per
    valid = (p < l_blk) & (local // wq < ho) & (local % wq < wo)
    s_mat = (valid[:, None] & ((p // l_per)[:, None] == jnp.arange(ns_p)[None, :]))
    s_mat = s_mat.astype(jnp.float32)                            # (L_out, ns_p)
    st_mat = s_mat.T                                             # (ns_p, L_out)

    # Output-channel tile: 256 fills the v6e/v7x MXU M dim; 128 on v5e.
    kind = jax.devices()[0].device_kind.lower()
    cap = 128 if "v5" in kind else 256
    tco = cap if c_out % cap == 0 else c_out
    ctiles = c_out // tco

    # Grid order: keep the larger operand resident across the inner grid axis
    # (weights for the deep layers, activations for the early ones).
    act_bytes = ngroups * rows_p * l_in * 2
    w_bytes = c_out * 4 * rows_p * 2
    w_resident = (ctiles - 1) * act_bytes < (ngroups - 1) * w_bytes
    if w_resident:
        grid = (ctiles, ngroups)
        x_map = lambda j, i: (i, 0, 0)
        w_map = lambda j, i: (j, 0)
        gb_map = lambda j, i: (j, 0)
        o_map = lambda j, i: (i, j, 0)
    else:
        grid = (ngroups, ctiles)
        x_map = lambda i, j: (i, 0, 0)
        w_map = lambda i, j: (j, 0)
        gb_map = lambda i, j: (j, 0)
        o_map = lambda i, j: (i, j, 0)

    out = pl.pallas_call(
        functools.partial(conv_in_lrelu_kernel, wq=wq, rows_p=rows_p,
                          inv_count=1.0 / float(ho * wo)),
        out_shape=jax.ShapeDtypeStruct((ngroups, c_out, l_out), jnp.bfloat16),
        grid=grid,
        in_specs=[
            pl.BlockSpec((1, rows_p, l_in), x_map),
            pl.BlockSpec((tco, 4 * rows_p), w_map),
            pl.BlockSpec((tco, 2), gb_map),
            pl.BlockSpec((l_out, ns_p), lambda a, b: (0, 0)),
            pl.BlockSpec((ns_p, l_out), lambda a, b: (0, 0)),
        ],
        out_specs=pl.BlockSpec((1, tco, l_out), o_map),
        scratch_shapes=[pltpu.VMEM((4 * rows_p, l_out), jnp.bfloat16)],
        compiler_params=pltpu.CompilerParams(
            dimension_semantics=("parallel", "parallel"),
            vmem_limit_bytes=32 * 1024 * 1024),
    )(xph, wflat, gb, s_mat, st_mat)

    # Strip junk rows/cols and un-stack the samples; result is NCHW.
    y = out[:, :, :l_blk].reshape(ngroups, c_out, ns, hq, wq)[:, :, :, :ho, :wo]
    return y.transpose(0, 2, 1, 3, 4).reshape(n, c_out, ho, wo)


def fc_heads(y, p_adv, p_att):
    """y: (N, F) -> (adv (N, 1), att (N, attr)); both heads fused in one call."""
    n, f = y.shape
    d = p_adv["w1"].shape[1]
    attr = p_att["w2"].shape[1]

    # Wide contraction tile keeps the streamed w1 near the HBM roofline; F is
    # zero-padded to a tile multiple so the tile never degenerates to all of F.
    tf = min(1024, _round_up(f, 128))
    f_pad = _round_up(f, tf)

    yb = jnp.pad(y, ((0, 0), (0, f_pad - f))).astype(jnp.bfloat16)
    w1 = jnp.concatenate([p_adv["w1"], p_att["w1"]], axis=1)
    w1 = jnp.pad(w1, ((0, f_pad - f), (0, 0))).astype(jnp.bfloat16)
    b1 = jnp.concatenate([p_adv["b1"], p_att["b1"]]).reshape(1, 2 * d)
    b1 = b1.astype(jnp.float32)
    # Block-diagonal second layer: column 0 -> adv, columns 1: -> att.
    w2 = jnp.zeros((2 * d, 1 + attr), jnp.float32)
    w2 = w2.at[:d, :1].set(p_adv["w2"]).at[d:, 1:].set(p_att["w2"])
    w2 = w2.astype(jnp.bfloat16)
    b2 = jnp.concatenate([p_adv["b2"], p_att["b2"]]).reshape(1, 1 + attr)
    b2 = b2.astype(jnp.float32)

    adv, att = pl.pallas_call(
        fc_heads_kernel,
        out_shape=(jax.ShapeDtypeStruct((n, 1), jnp.float32),
                   jax.ShapeDtypeStruct((n, attr), jnp.float32)),
        grid=(f_pad // tf,),
        in_specs=[
            pl.BlockSpec((n, tf), lambda k: (0, k)),
            pl.BlockSpec((tf, 2 * d), lambda k: (k, 0)),
            pl.BlockSpec((1, 2 * d), lambda k: (0, 0)),
            pl.BlockSpec((2 * d, 1 + attr), lambda k: (0, 0)),
            pl.BlockSpec((1, 1 + attr), lambda k: (0, 0)),
        ],
        out_specs=(pl.BlockSpec((n, 1), lambda k: (0, 0)),
                   pl.BlockSpec((n, attr), lambda k: (0, 0))),
        scratch_shapes=[pltpu.VMEM((n, 2 * d), jnp.float32)],
        compiler_params=pltpu.CompilerParams(
            dimension_semantics=("arbitrary",),
            vmem_limit_bytes=32 * 1024 * 1024),
    )(yb, w1, b1, w2, b2)
    return adv, att


def discriminator_forward(x, params):
    y = x
    for layer in params["conv"]:
        # layer["b"] is unused: it is cancelled exactly by the InstanceNorm mean.
        y = conv_in_lrelu(y, layer["w"], layer["gamma"], layer["beta"])
    y = y.reshape(y.shape[0], -1)          # NCHW flatten == torch .view(N, -1)
    return fc_heads(y, params["adv"], params["att"])


# ----------------------------------------------------------------------------
# Pure-JAX f32 reference (semantic ground truth, including the no-op conv bias)
# ----------------------------------------------------------------------------
def reference_forward(x, params):
    y = x
    for layer in params["conv"]:
        y = jax.lax.conv_general_dilated(
            y, layer["w"], window_strides=(2, 2), padding=((1, 1), (1, 1)),
            dimension_numbers=("NCHW", "OIHW", "NCHW"))
        y = y + layer["b"][None, :, None, None]
        mean = jnp.mean(y, axis=(2, 3), keepdims=True)
        var = jnp.mean((y - mean) ** 2, axis=(2, 3), keepdims=True)
        y = (y - mean) * jax.lax.rsqrt(var + 1e-5)
        y = y * layer["gamma"][None, :, None, None] + layer["beta"][None, :, None, None]
        y = jnp.where(y >= 0, y, 0.2 * y)
    y = y.reshape(y.shape[0], -1)

    def head(p, sig):
        h = y @ p["w1"] + p["b1"]
        h = jnp.where(h >= 0, h, 0.2 * h)
        o = h @ p["w2"] + p["b2"]
        return jax.nn.sigmoid(o) if sig else o

    return head(params["adv"], False), head(params["att"], True)


# ----------------------------------------------------------------------------
# Deterministic parameter init (synthetic, matches PyTorch shapes)
# ----------------------------------------------------------------------------
def init_params(key, image_size, attr_dim, conv_dim, fc_dim, n_layers):
    keys = iter(jax.random.split(key, 64))
    conv_layers = []
    in_ch = 3
    for i in range(n_layers):
        out_ch = conv_dim * 2 ** i
        conv_layers.append(dict(
            w=0.05 * jax.random.normal(next(keys), (out_ch, in_ch, 4, 4), jnp.float32),
            b=0.05 * jax.random.normal(next(keys), (out_ch,), jnp.float32),
            gamma=1.0 + 0.05 * jax.random.normal(next(keys), (out_ch,), jnp.float32),
            beta=0.05 * jax.random.normal(next(keys), (out_ch,), jnp.float32),
        ))
        in_ch = out_ch

    feat = image_size // 2 ** n_layers
    flat = conv_dim * 2 ** (n_layers - 1) * feat ** 2

    def head_params(out_dim):
        return dict(
            w1=0.05 * jax.random.normal(next(keys), (flat, fc_dim), jnp.float32),
            b1=0.05 * jax.random.normal(next(keys), (fc_dim,), jnp.float32),
            w2=0.05 * jax.random.normal(next(keys), (fc_dim, out_dim), jnp.float32),
            b2=0.05 * jax.random.normal(next(keys), (out_dim,), jnp.float32),
        )

    return dict(conv=conv_layers, adv=head_params(1), att=head_params(attr_dim))


# ----------------------------------------------------------------------------
if __name__ == "__main__":
    # Small config consistent with the module structure.
    IMAGE_SIZE, ATTR_DIM, CONV_DIM, FC_DIM, N_LAYERS = 32, 4, 8, 32, 3
    BATCH = 2

    key = jax.random.PRNGKey(0)
    k_x, k_p = jax.random.split(key)
    x = jax.random.normal(k_x, (BATCH, 3, IMAGE_SIZE, IMAGE_SIZE), jnp.float32)
    params = init_params(k_p, IMAGE_SIZE, ATTR_DIM, CONV_DIM, FC_DIM, N_LAYERS)

    adv, att = jax.jit(discriminator_forward)(x, params)
    adv = jax.block_until_ready(adv)
    att = jax.block_until_ready(att)

    adv_ref, att_ref = reference_forward(x, params)
    assert adv.shape == (BATCH, 1) and att.shape == (BATCH, ATTR_DIM)
    # bf16 matmuls (conv + segment-sum statistics) vs f32 reference.
    assert jnp.allclose(adv, adv_ref, rtol=6e-2, atol=6e-2)
    assert jnp.allclose(att, att_ref, rtol=6e-2, atol=6e-2)

    print("KERNEL_OK")
</pallas_src>

<mosaic_0001>
module attributes {stable_mosaic.version = 11 : i64} {
  func.func @conv_in_lrelu_kernel(%arg0: i32, %arg1: i32, %arg2: memref<1x16x512xbf16, #tpu.memory_space<vmem>>, %arg3: memref<8x64xbf16, #tpu.memory_space<vmem>>, %arg4: memref<8x2xf32, #tpu.memory_space<vmem>>, %arg5: memref<384x8xf32, #tpu.memory_space<vmem>>, %arg6: memref<8x384xf32, #tpu.memory_space<vmem>>, %arg7: memref<1x8x384xbf16, #tpu.memory_space<vmem>>, %arg8: memref<64x384xbf16, #tpu.memory_space<vmem>>) attributes {dimension_semantics = [#tpu.dimension_semantics<parallel>, #tpu.dimension_semantics<parallel>], iteration_bounds = array<i64: 1, 2>, scalar_prefetch = 0 : i64, scratch_operands = 1 : i64, tpu.core_type = #tpu.core_type<tc>, window_params = [{transform_indices = @transform_0, window_bounds = array<i64: 1, 16, 512>}, {transform_indices = @transform_1, window_bounds = array<i64: 8, 64>}, {transform_indices = @transform_2, window_bounds = array<i64: 8, 2>}, {pipeline_mode = #tpu.pipeline_mode<synchronous>, transform_indices = @transform_3, window_bounds = array<i64: 384, 8>}, {pipeline_mode = #tpu.pipeline_mode<synchronous>, transform_indices = @transform_4, window_bounds = array<i64: 8, 384>}, {transform_indices = @transform_5, window_bounds = array<i64: 1, 8, 384>}]} {
    %c0 = arith.constant 0 : index
    %c0_0 = arith.constant 0 : index
    %c0_1 = arith.constant 0 : index
    %0 = vector.load %arg2[%c0, %c0_0, %c0_1] : memref<1x16x512xbf16, #tpu.memory_space<vmem>>, vector<1x16x384xbf16>
    %1 = vector.shape_cast %0 : vector<1x16x384xbf16> to vector<16x384xbf16>
    %c0_2 = arith.constant 0 : index
    %c0_3 = arith.constant 0 : index
    %2 = vector.load %arg8[%c0_2, %c0_3] : memref<64x384xbf16, #tpu.memory_space<vmem>>, vector<16x384xbf16>
    tpu.vector_store %arg8[%c0_2, %c0_3], %1 {strides = array<i32>} : memref<64x384xbf16, #tpu.memory_space<vmem>>, vector<16x384xbf16>,
    %c0_4 = arith.constant 0 : index
    %c0_5 = arith.constant 0 : index
    %c1 = arith.constant 1 : index
    %3 = vector.load %arg2[%c0_4, %c0_5, %c1] : memref<1x16x512xbf16, #tpu.memory_space<vmem>>, vector<1x16x384xbf16>
    %4 = vector.shape_cast %3 : vector<1x16x384xbf16> to vector<16x384xbf16>
    %c16 = arith.constant 16 : index
    %c0_6 = arith.constant 0 : index
    %5 = vector.load %arg8[%c16, %c0_6] : memref<64x384xbf16, #tpu.memory_space<vmem>>, vector<16x384xbf16>
    tpu.vector_store %arg8[%c16, %c0_6], %4 {strides = array<i32>} : memref<64x384xbf16, #tpu.memory_space<vmem>>, vector<16x384xbf16>,
    %c0_7 = arith.constant 0 : index
    %c0_8 = arith.constant 0 : index
    %c17 = arith.constant 17 : index
    %6 = vector.load %arg2[%c0_7, %c0_8, %c17] : memref<1x16x512xbf16, #tpu.memory_space<vmem>>, vector<1x16x384xbf16>
    %7 = vector.shape_cast %6 : vector<1x16x384xbf16> to vector<16x384xbf16>
    %c32 = arith.constant 32 : index
    %c0_9 = arith.constant 0 : index
    %8 = vector.load %arg8[%c32, %c0_9] : memref<64x384xbf16, #tpu.memory_space<vmem>>, vector<16x384xbf16>
    tpu.vector_store %arg8[%c32, %c0_9], %7 {strides = array<i32>} : memref<64x384xbf16, #tpu.memory_space<vmem>>, vector<16x384xbf16>,
    %c0_10 = arith.constant 0 : index
    %c0_11 = arith.constant 0 : index
    %c18 = arith.constant 18 : index
    %9 = vector.load %arg2[%c0_10, %c0_11, %c18] : memref<1x16x512xbf16, #tpu.memory_space<vmem>>, vector<1x16x384xbf16>
    %10 = vector.shape_cast %9 : vector<1x16x384xbf16> to vector<16x384xbf16>
    %c48 = arith.constant 48 : index
    %c0_12 = arith.constant 0 : index
    %11 = vector.load %arg8[%c48, %c0_12] : memref<64x384xbf16, #tpu.memory_space<vmem>>, vector<16x384xbf16>
    tpu.vector_store %arg8[%c48, %c0_12], %10 {strides = array<i32>} : memref<64x384xbf16, #tpu.memory_space<vmem>>, vector<16x384xbf16>,
    %c0_13 = arith.constant 0 : index
    %c0_14 = arith.constant 0 : index
    %12 = vector.load %arg3[%c0_13, %c0_14] : memref<8x64xbf16, #tpu.memory_space<vmem>>, vector<8x64xbf16>
    %c0_15 = arith.constant 0 : index
    %c0_16 = arith.constant 0 : index
    %13 = vector.load %arg8[%c0_15, %c0_16] : memref<64x384xbf16, #tpu.memory_space<vmem>>, vector<64x384xbf16>
    %cst = arith.constant dense<0.000000e+00> : vector<8x384xf32>
    %14 = tpu.matmul %12, %13, %cst {dimension_numbers = #tpu.dot_dimension_numbers<[1], [0], [0], [1], [0, 0, 1, 1], [], []>} : vector<8x64xbf16>, vector<64x384xbf16>, vector<8x384xf32> -> vector<8x384xf32>
    %c0_17 = arith.constant 0 : index
    %c0_18 = arith.constant 0 : index
    %15 = vector.load %arg5[%c0_17, %c0_18] : memref<384x8xf32, #tpu.memory_space<vmem>>, vector<384x8xf32>
    %cst_19 = arith.constant dense<0.000000e+00> : vector<8x8xf32>
    %16 = tpu.matmul %14, %15, %cst_19 {dimension_numbers = #tpu.dot_dimension_numbers<[1], [0], [0], [1], [0, 0, 1, 1], [], []>} : vector<8x384xf32>, vector<384x8xf32>, vector<8x8xf32> -> vector<8x8xf32>
    %cst_20 = arith.constant 3.906250e-03 : f32
    %17 = vector.broadcast %cst_20 : f32 to vector<8x8xf32>
    %18 = arith.mulf %16, %17 : vector<8x8xf32>
    %c0_21 = arith.constant 0 : index
    %c0_22 = arith.constant 0 : index
    %19 = vector.load %arg6[%c0_21, %c0_22] : memref<8x384xf32, #tpu.memory_space<vmem>>, vector<8x384xf32>
    %cst_23 = arith.constant dense<0.000000e+00> : vector<8x384xf32>
    %20 = tpu.matmul %18, %19, %cst_23 {dimension_numbers = #tpu.dot_dimension_numbers<[1], [0], [0], [1], [0, 0, 1, 1], [], []>} : vector<8x8xf32>, vector<8x384xf32>, vector<8x384xf32> -> vector<8x384xf32>
    %21 = arith.subf %14, %20 : vector<8x384xf32>
    %22 = arith.mulf %21, %21 : vector<8x384xf32>
    %c0_24 = arith.constant 0 : index
    %c0_25 = arith.constant 0 : index
    %23 = vector.load %arg5[%c0_24, %c0_25] : memref<384x8xf32, #tpu.memory_space<vmem>>, vector<384x8xf32>
    %cst_26 = arith.constant dense<0.000000e+00> : vector<8x8xf32>
    %24 = tpu.matmul %22, %23, %cst_26 {dimension_numbers = #tpu.dot_dimension_numbers<[1], [0], [0], [1], [0, 0, 1, 1], [], []>} : vector<8x384xf32>, vector<384x8xf32>, vector<8x8xf32> -> vector<8x8xf32>
    %cst_27 = arith.constant 3.906250e-03 : f32
    %25 = vector.broadcast %cst_27 : f32 to vector<8x8xf32>
    %26 = arith.mulf %24, %25 : vector<8x8xf32>
    %cst_28 = arith.constant 0.000000e+00 : f32
    %27 = vector.broadcast %cst_28 : f32 to vector<8x8xf32>
    %28 = arith.maximumf %26, %27 : vector<8x8xf32>
    %c0_29 = arith.constant 0 : index
    %c0_30 = arith.constant 0 : index
    %29 = vector.load %arg4[%c0_29, %c0_30] : memref<8x2xf32, #tpu.memory_space<vmem>>, vector<8x1xf32>
    %cst_31 = arith.constant 9.99999974E-6 : f32
    %30 = vector.broadcast %cst_31 : f32 to vector<8x8xf32>
    %31 = arith.addf %28, %30 : vector<8x8xf32>
    %32 = math.rsqrt %31 : vector<8x8xf32>
    %33 = vector.broadcast %29 : vector<8x1xf32> to vector<8x8xf32>
    %34 = arith.mulf %33, %32 : vector<8x8xf32>
    %c0_32 = arith.constant 0 : index
    %c0_33 = arith.constant 0 : index
    %35 = vector.load %arg6[%c0_32, %c0_33] : memref<8x384xf32, #tpu.memory_space<vmem>>, vector<8x384xf32>
    %cst_34 = arith.constant dense<0.000000e+00> : vector<8x384xf32>
    %36 = tpu.matmul %34, %35, %cst_34 {dimension_numbers = #tpu.dot_dimension_numbers<[1], [0], [0], [1], [0, 0, 1, 1], [], []>} : vector<8x8xf32>, vector<8x384xf32>, vector<8x384xf32> -> vector<8x384xf32>
    %37 = arith.mulf %21, %36 : vector<8x384xf32>
    %c0_35 = arith.constant 0 : index
    %c1_36 = arith.constant 1 : index
    %38 = vector.load %arg4[%c0_35, %c1_36] : memref<8x2xf32, #tpu.memory_space<vmem>>, vector<8x1xf32>
    %39 = vector.broadcast %38 : vector<8x1xf32> to vector<8x384xf32>
    %40 = arith.addf %37, %39 : vector<8x384xf32>
    %cst_37 = arith.constant 0.000000e+00 : f32
    %41 = vector.broadcast %cst_37 : f32 to vector<8x384xf32>
    %42 = arith.cmpf oge, %40, %41 : vector<8x384xf32>
    %cst_38 = arith.constant 2.000000e-01 : f32
    %43 = vector.broadcast %cst_38 : f32 to vector<8x384xf32>
    %44 = arith.mulf %43, %40 : vector<8x384xf32>
    %45 = arith.select %42, %40, %44 : vector<8x384xi1>, vector<8x384xf32>
    %46 = arith.truncf %45 : vector<8x384xf32> to vector<8x384xbf16>
    %c0_39 = arith.constant 0 : index
    %c0_40 = arith.constant 0 : index
    %c0_41 = arith.constant 0 : index
    %47 = vector.load %arg7[%c0_39, %c0_40, %c0_41] : memref<1x8x384xbf16, #tpu.memory_space<vmem>>, vector<1x8x384xbf16>
    %48 = vector.shape_cast %47 : vector<1x8x384xbf16> to vector<8x384xbf16>
    %49 = vector.shape_cast %46 : vector<8x384xbf16> to vector<1x8x384xbf16>
    tpu.vector_store %arg7[%c0_39, %c0_40, %c0_41], %49 {strides = array<i32>} : memref<1x8x384xbf16, #tpu.memory_space<vmem>>, vector<1x8x384xbf16>,
    return
  }
  func.func @transform_0(%arg0: i32, %arg1: i32) -> (i32, i32, i32) {
    %c0_i32 = arith.constant 0 : i32
    %c0_i32_0 = arith.constant 0 : i32
    %c0_i32_1 = arith.constant 0 : i32
    return %arg1, %c0_i32, %c0_i32_0 : i32, i32, i32
  }
  func.func @transform_1(%arg0: i32, %arg1: i32) -> (i32, i32) {
    %c0_i32 = arith.constant 0 : i32
    %c0_i32_0 = arith.constant 0 : i32
    return %arg0, %c0_i32 : i32, i32
  }
  func.func @transform_2(%arg0: i32, %arg1: i32) -> (i32, i32) {
    %c0_i32 = arith.constant 0 : i32
    %c0_i32_0 = arith.constant 0 : i32
    return %arg0, %c0_i32 : i32, i32
  }
  func.func @transform_3(%arg0: i32, %arg1: i32) -> (i32, i32) {
    %c0_i32 = arith.constant 0 : i32
    %c0_i32_0 = arith.constant 0 : i32
    %c0_i32_1 = arith.constant 0 : i32
    return %c0_i32, %c0_i32_0 : i32, i32
  }
  func.func @transform_4(%arg0: i32, %arg1: i32) -> (i32, i32) {
    %c0_i32 = arith.constant 0 : i32
    %c0_i32_0 = arith.constant 0 : i32
    %c0_i32_1 = arith.constant 0 : i32
    return %c0_i32, %c0_i32_0 : i32, i32
  }
  func.func @transform_5(%arg0: i32, %arg1: i32) -> (i32, i32, i32) {
    %c0_i32 = arith.constant 0 : i32
    %c0_i32_0 = arith.constant 0 : i32
    return %arg1, %arg0, %c0_i32 : i32, i32, i32
  }
}

module attributes {stable_mosaic.version = 11 : i64} {
  func.func @conv_in_lrelu_kernel(%arg0: i32, %arg1: i32, %arg2: memref<1x32x384xbf16, #tpu.memory_space<vmem>>, %arg3: memref<16x128xbf16, #tpu.memory_space<vmem>>, %arg4: memref<16x2xf32, #tpu.memory_space<vmem>>, %arg5: memref<256x8xf32, #tpu.memory_space<vmem>>, %arg6: memref<8x256xf32, #tpu.memory_space<vmem>>, %arg7: memref<1x16x256xbf16, #tpu.memory_space<vmem>>, %arg8: memref<128x256xbf16, #tpu.memory_space<vmem>>) attributes {dimension_semantics = [#tpu.dimension_semantics<parallel>, #tpu.dimension_semantics<parallel>], iteration_bounds = array<i64: 1, 1>, scalar_prefetch = 0 : i64, scratch_operands = 1 : i64, tpu.core_type = #tpu.core_type<tc>, window_params = [{transform_indices = @transform_0, window_bounds = array<i64: 1, 32, 384>}, {transform_indices = @transform_1, window_bounds = array<i64: 16, 128>}, {transform_indices = @transform_2, window_bounds = array<i64: 16, 2>}, {pipeline_mode = #tpu.pipeline_mode<synchronous>, transform_indices = @transform_3, window_bounds = array<i64: 256, 8>}, {pipeline_mode = #tpu.pipeline_mode<synchronous>, transform_indices = @transform_4, window_bounds = array<i64: 8, 256>}, {transform_indices = @transform_5, window_bounds = array<i64: 1, 16, 256>}]} {
    %c0 = arith.constant 0 : index
    %c0_0 = arith.constant 0 : index
    %c0_1 = arith.constant 0 : index
    %0 = vector.load %arg2[%c0, %c0_0, %c0_1] : memref<1x32x384xbf16, #tpu.memory_space<vmem>>, vector<1x32x256xbf16>
    %1 = vector.shape_cast %0 : vector<1x32x256xbf16> to vector<32x256xbf16>
    %c0_2 = arith.constant 0 : index
    %c0_3 = arith.constant 0 : index
    %2 = vector.load %arg8[%c0_2, %c0_3] : memref<128x256xbf16, #tpu.memory_space<vmem>>, vector<32x256xbf16>
    tpu.vector_store %arg8[%c0_2, %c0_3], %1 {strides = array<i32>} : memref<128x256xbf16, #tpu.memory_space<vmem>>, vector<32x256xbf16>,
    %c0_4 = arith.constant 0 : index
    %c0_5 = arith.constant 0 : index
    %c1 = arith.constant 1 : index
    %3 = vector.load %arg2[%c0_4, %c0_5, %c1] : memref<1x32x384xbf16, #tpu.memory_space<vmem>>, vector<1x32x256xbf16>
    %4 = vector.shape_cast %3 : vector<1x32x256xbf16> to vector<32x256xbf16>
    %c32 = arith.constant 32 : index
    %c0_6 = arith.constant 0 : index
    %5 = vector.load %arg8[%c32, %c0_6] : memref<128x256xbf16, #tpu.memory_space<vmem>>, vector<32x256xbf16>
    tpu.vector_store %arg8[%c32, %c0_6], %4 {strides = array<i32>} : memref<128x256xbf16, #tpu.memory_space<vmem>>, vector<32x256xbf16>,
    %c0_7 = arith.constant 0 : index
    %c0_8 = arith.constant 0 : index
    %c9 = arith.constant 9 : index
    %6 = vector.load %arg2[%c0_7, %c0_8, %c9] : memref<1x32x384xbf16, #tpu.memory_space<vmem>>, vector<1x32x256xbf16>
    %7 = vector.shape_cast %6 : vector<1x32x256xbf16> to vector<32x256xbf16>
    %c64 = arith.constant 64 : index
    %c0_9 = arith.constant 0 : index
    %8 = vector.load %arg8[%c64, %c0_9] : memref<128x256xbf16, #tpu.memory_space<vmem>>, vector<32x256xbf16>
    tpu.vector_store %arg8[%c64, %c0_9], %7 {strides = array<i32>} : memref<128x256xbf16, #tpu.memory_space<vmem>>, vector<32x256xbf16>,
    %c0_10 = arith.constant 0 : index
    %c0_11 = arith.constant 0 : index
    %c10 = arith.constant 10 : index
    %9 = vector.load %arg2[%c0_10, %c0_11, %c10] : memref<1x32x384xbf16, #tpu.memory_space<vmem>>, vector<1x32x256xbf16>
    %10 = vector.shape_cast %9 : vector<1x32x256xbf16> to vector<32x256xbf16>
    %c96 = arith.constant 96 : index
    %c0_12 = arith.constant 0 : index
    %11 = vector.load %arg8[%c96, %c0_12] : memref<128x256xbf16, #tpu.memory_space<vmem>>, vector<32x256xbf16>
    tpu.vector_store %arg8[%c96, %c0_12], %10 {strides = array<i32>} : memref<128x256xbf16, #tpu.memory_space<vmem>>, vector<32x256xbf16>,
    %c0_13 = arith.constant 0 : index
    %c0_14 = arith.constant 0 : index
    %12 = vector.load %arg3[%c0_13, %c0_14] : memref<16x128xbf16, #tpu.memory_space<vmem>>, vector<16x128xbf16>
    %c0_15 = arith.constant 0 : index
    %c0_16 = arith.constant 0 : index
    %13 = vector.load %arg8[%c0_15, %c0_16] : memref<128x256xbf16, #tpu.memory_space<vmem>>, vector<128x256xbf16>
    %cst = arith.constant dense<0.000000e+00> : vector<16x256xf32>
    %14 = tpu.matmul %12, %13, %cst {dimension_numbers = #tpu.dot_dimension_numbers<[1], [0], [0], [1], [0, 0, 1, 1], [], []>} : vector<16x128xbf16>, vector<128x256xbf16>, vector<16x256xf32> -> vector<16x256xf32>
    %c0_17 = arith.constant 0 : index
    %c0_18 = arith.constant 0 : index
    %15 = vector.load %arg5[%c0_17, %c0_18] : memref<256x8xf32, #tpu.memory_space<vmem>>, vector<256x8xf32>
    %cst_19 = arith.constant dense<0.000000e+00> : vector<16x8xf32>
    %16 = tpu.matmul %14, %15, %cst_19 {dimension_numbers = #tpu.dot_dimension_numbers<[1], [0], [0], [1], [0, 0, 1, 1], [], []>} : vector<16x256xf32>, vector<256x8xf32>, vector<16x8xf32> -> vector<16x8xf32>
    %cst_20 = arith.constant 1.562500e-02 : f32
    %17 = vector.broadcast %cst_20 : f32 to vector<16x8xf32>
    %18 = arith.mulf %16, %17 : vector<16x8xf32>
    %c0_21 = arith.constant 0 : index
    %c0_22 = arith.constant 0 : index
    %19 = vector.load %arg6[%c0_21, %c0_22] : memref<8x256xf32, #tpu.memory_space<vmem>>, vector<8x256xf32>
    %cst_23 = arith.constant dense<0.000000e+00> : vector<16x256xf32>
    %20 = tpu.matmul %18, %19, %cst_23 {dimension_numbers = #tpu.dot_dimension_numbers<[1], [0], [0], [1], [0, 0, 1, 1], [], []>} : vector<16x8xf32>, vector<8x256xf32>, vector<16x256xf32> -> vector<16x256xf32>
    %21 = arith.subf %14, %20 : vector<16x256xf32>
    %22 = arith.mulf %21, %21 : vector<16x256xf32>
    %c0_24 = arith.constant 0 : index
    %c0_25 = arith.constant 0 : index
    %23 = vector.load %arg5[%c0_24, %c0_25] : memref<256x8xf32, #tpu.memory_space<vmem>>, vector<256x8xf32>
    %cst_26 = arith.constant dense<0.000000e+00> : vector<16x8xf32>
    %24 = tpu.matmul %22, %23, %cst_26 {dimension_numbers = #tpu.dot_dimension_numbers<[1], [0], [0], [1], [0, 0, 1, 1], [], []>} : vector<16x256xf32>, vector<256x8xf32>, vector<16x8xf32> -> vector<16x8xf32>
    %cst_27 = arith.constant 1.562500e-02 : f32
    %25 = vector.broadcast %cst_27 : f32 to vector<16x8xf32>
    %26 = arith.mulf %24, %25 : vector<16x8xf32>
    %cst_28 = arith.constant 0.000000e+00 : f32
    %27 = vector.broadcast %cst_28 : f32 to vector<16x8xf32>
    %28 = arith.maximumf %26, %27 : vector<16x8xf32>
    %c0_29 = arith.constant 0 : index
    %c0_30 = arith.constant 0 : index
    %29 = vector.load %arg4[%c0_29, %c0_30] : memref<16x2xf32, #tpu.memory_space<vmem>>, vector<16x1xf32>
    %cst_31 = arith.constant 9.99999974E-6 : f32
    %30 = vector.broadcast %cst_31 : f32 to vector<16x8xf32>
    %31 = arith.addf %28, %30 : vector<16x8xf32>
    %32 = math.rsqrt %31 : vector<16x8xf32>
    %33 = vector.broadcast %29 : vector<16x1xf32> to vector<16x8xf32>
    %34 = arith.mulf %33, %32 : vector<16x8xf32>
    %c0_32 = arith.constant 0 : index
    %c0_33 = arith.constant 0 : index
    %35 = vector.load %arg6[%c0_32, %c0_33] : memref<8x256xf32, #tpu.memory_space<vmem>>, vector<8x256xf32>
    %cst_34 = arith.constant dense<0.000000e+00> : vector<16x256xf32>
    %36 = tpu.matmul %34, %35, %cst_34 {dimension_numbers = #tpu.dot_dimension_numbers<[1], [0], [0], [1], [0, 0, 1, 1], [], []>} : vector<16x8xf32>, vector<8x256xf32>, vector<16x256xf32> -> vector<16x256xf32>
    %37 = arith.mulf %21, %36 : vector<16x256xf32>
    %c0_35 = arith.constant 0 : index
    %c1_36 = arith.constant 1 : index
    %38 = vector.load %arg4[%c0_35, %c1_36] : memref<16x2xf32, #tpu.memory_space<vmem>>, vector<16x1xf32>
    %39 = vector.broadcast %38 : vector<16x1xf32> to vector<16x256xf32>
    %40 = arith.addf %37, %39 : vector<16x256xf32>
    %cst_37 = arith.constant 0.000000e+00 : f32
    %41 = vector.broadcast %cst_37 : f32 to vector<16x256xf32>
    %42 = arith.cmpf oge, %40, %41 : vector<16x256xf32>
    %cst_38 = arith.constant 2.000000e-01 : f32
    %43 = vector.broadcast %cst_38 : f32 to vector<16x256xf32>
    %44 = arith.mulf %43, %40 : vector<16x256xf32>
    %45 = arith.select %42, %40, %44 : vector<16x256xi1>, vector<16x256xf32>
    %46 = arith.truncf %45 : vector<16x256xf32> to vector<16x256xbf16>
    %c0_39 = arith.constant 0 : index
    %c0_40 = arith.constant 0 : index
    %c0_41 = arith.constant 0 : index
    %47 = vector.load %arg7[%c0_39, %c0_40, %c0_41] : memref<1x16x256xbf16, #tpu.memory_space<vmem>>, vector<1x16x256xbf16>
    %48 = vector.shape_cast %47 : vector<1x16x256xbf16> to vector<16x256xbf16>
    %49 = vector.shape_cast %46 : vector<16x256xbf16> to vector<1x16x256xbf16>
    tpu.vector_store %arg7[%c0_39, %c0_40, %c0_41], %49 {strides = array<i32>} : memref<1x16x256xbf16, #tpu.memory_space<vmem>>, vector<1x16x256xbf16>,
    return
  }
  func.func @transform_0(%arg0: i32, %arg1: i32) -> (i32, i32, i32) {
    %c0_i32 = arith.constant 0 : i32
    %c0_i32_0 = arith.constant 0 : i32
    %c0_i32_1 = arith.constant 0 : i32
    return %arg0, %c0_i32, %c0_i32_0 : i32, i32, i32
  }
  func.func @transform_1(%arg0: i32, %arg1: i32) -> (i32, i32) {
    %c0_i32 = arith.constant 0 : i32
    %c0_i32_0 = arith.constant 0 : i32
    return %arg1, %c0_i32 : i32, i32
  }
  func.func @transform_2(%arg0: i32, %arg1: i32) -> (i32, i32) {
    %c0_i32 = arith.constant 0 : i32
    %c0_i32_0 = arith.constant 0 : i32
    return %arg1, %c0_i32 : i32, i32
  }
  func.func @transform_3(%arg0: i32, %arg1: i32) -> (i32, i32) {
    %c0_i32 = arith.constant 0 : i32
    %c0_i32_0 = arith.constant 0 : i32
    %c0_i32_1 = arith.constant 0 : i32
    return %c0_i32, %c0_i32_0 : i32, i32
  }
  func.func @transform_4(%arg0: i32, %arg1: i32) -> (i32, i32) {
    %c0_i32 = arith.constant 0 : i32
    %c0_i32_0 = arith.constant 0 : i32
    %c0_i32_1 = arith.constant 0 : i32
    return %c0_i32, %c0_i32_0 : i32, i32
  }
  func.func @transform_5(%arg0: i32, %arg1: i32) -> (i32, i32, i32) {
    %c0_i32 = arith.constant 0 : i32
    %c0_i32_0 = arith.constant 0 : i32
    return %arg0, %arg1, %c0_i32 : i32, i32, i32
  }
}

module attributes {stable_mosaic.version = 11 : i64} {
  func.func @conv_in_lrelu_kernel(%arg0: i32, %arg1: i32, %arg2: memref<1x64x256xbf16, #tpu.memory_space<vmem>>, %arg3: memref<32x256xbf16, #tpu.memory_space<vmem>>, %arg4: memref<32x2xf32, #tpu.memory_space<vmem>>, %arg5: memref<128x8xf32, #tpu.memory_space<vmem>>, %arg6: memref<8x128xf32, #tpu.memory_space<vmem>>, %arg7: memref<1x32x128xbf16, #tpu.memory_space<vmem>>, %arg8: memref<256x128xbf16, #tpu.memory_space<vmem>>) attributes {dimension_semantics = [#tpu.dimension_semantics<parallel>, #tpu.dimension_semantics<parallel>], iteration_bounds = array<i64: 1, 1>, scalar_prefetch = 0 : i64, scratch_operands = 1 : i64, tpu.core_type = #tpu.core_type<tc>, window_params = [{transform_indices = @transform_0, window_bounds = array<i64: 1, 64, 256>}, {transform_indices = @transform_1, window_bounds = array<i64: 32, 256>}, {transform_indices = @transform_2, window_bounds = array<i64: 32, 2>}, {pipeline_mode = #tpu.pipeline_mode<synchronous>, transform_indices = @transform_3, window_bounds = array<i64: 128, 8>}, {pipeline_mode = #tpu.pipeline_mode<synchronous>, transform_indices = @transform_4, window_bounds = array<i64: 8, 128>}, {transform_indices = @transform_5, window_bounds = array<i64: 1, 32, 128>}]} {
    %c0 = arith.constant 0 : index
    %c0_0 = arith.constant 0 : index
    %c0_1 = arith.constant 0 : index
    %0 = vector.load %arg2[%c0, %c0_0, %c0_1] : memref<1x64x256xbf16, #tpu.memory_space<vmem>>, vector<1x64x128xbf16>
    %1 = vector.shape_cast %0 : vector<1x64x128xbf16> to vector<64x128xbf16>
    %c0_2 = arith.constant 0 : index
    %c0_3 = arith.constant 0 : index
    %2 = vector.load %arg8[%c0_2, %c0_3] : memref<256x128xbf16, #tpu.memory_space<vmem>>, vector<64x128xbf16>
    tpu.vector_store %arg8[%c0_2, %c0_3], %1 {strides = array<i32>} : memref<256x128xbf16, #tpu.memory_space<vmem>>, vector<64x128xbf16>,
    %c0_4 = arith.constant 0 : index
    %c0_5 = arith.constant 0 : index
    %c1 = arith.constant 1 : index
    %3 = vector.load %arg2[%c0_4, %c0_5, %c1] : memref<1x64x256xbf16, #tpu.memory_space<vmem>>, vector<1x64x128xbf16>
    %4 = vector.shape_cast %3 : vector<1x64x128xbf16> to vector<64x128xbf16>
    %c64 = arith.constant 64 : index
    %c0_6 = arith.constant 0 : index
    %5 = vector.load %arg8[%c64, %c0_6] : memref<256x128xbf16, #tpu.memory_space<vmem>>, vector<64x128xbf16>
    tpu.vector_store %arg8[%c64, %c0_6], %4 {strides = array<i32>} : memref<256x128xbf16, #tpu.memory_space<vmem>>, vector<64x128xbf16>,
    %c0_7 = arith.constant 0 : index
    %c0_8 = arith.constant 0 : index
    %c5 = arith.constant 5 : index
    %6 = vector.load %arg2[%c0_7, %c0_8, %c5] : memref<1x64x256xbf16, #tpu.memory_space<vmem>>, vector<1x64x128xbf16>
    %7 = vector.shape_cast %6 : vector<1x64x128xbf16> to vector<64x128xbf16>
    %c128 = arith.constant 128 : index
    %c0_9 = arith.constant 0 : index
    %8 = vector.load %arg8[%c128, %c0_9] : memref<256x128xbf16, #tpu.memory_space<vmem>>, vector<64x128xbf16>
    tpu.vector_store %arg8[%c128, %c0_9], %7 {strides = array<i32>} : memref<256x128xbf16, #tpu.memory_space<vmem>>, vector<64x128xbf16>,
    %c0_10 = arith.constant 0 : index
    %c0_11 = arith.constant 0 : index
    %c6 = arith.constant 6 : index
    %9 = vector.load %arg2[%c0_10, %c0_11, %c6] : memref<1x64x256xbf16, #tpu.memory_space<vmem>>, vector<1x64x128xbf16>
    %10 = vector.shape_cast %9 : vector<1x64x128xbf16> to vector<64x128xbf16>
    %c192 = arith.constant 192 : index
    %c0_12 = arith.constant 0 : index
    %11 = vector.load %arg8[%c192, %c0_12] : memref<256x128xbf16, #tpu.memory_space<vmem>>, vector<64x128xbf16>
    tpu.vector_store %arg8[%c192, %c0_12], %10 {strides = array<i32>} : memref<256x128xbf16, #tpu.memory_space<vmem>>, vector<64x128xbf16>,
    %c0_13 = arith.constant 0 : index
    %c0_14 = arith.constant 0 : index
    %12 = vector.load %arg3[%c0_13, %c0_14] : memref<32x256xbf16, #tpu.memory_space<vmem>>, vector<32x256xbf16>
    %c0_15 = arith.constant 0 : index
    %c0_16 = arith.constant 0 : index
    %13 = vector.load %arg8[%c0_15, %c0_16] : memref<256x128xbf16, #tpu.memory_space<vmem>>, vector<256x128xbf16>
    %cst = arith.constant dense<0.000000e+00> : vector<32x128xf32>
    %14 = tpu.matmul %12, %13, %cst {dimension_numbers = #tpu.dot_dimension_numbers<[1], [0], [0], [1], [0, 0, 1, 1], [], []>} : vector<32x256xbf16>, vector<256x128xbf16>, vector<32x128xf32> -> vector<32x128xf32>
    %c0_17 = arith.constant 0 : index
    %c0_18 = arith.constant 0 : index
    %15 = vector.load %arg5[%c0_17, %c0_18] : memref<128x8xf32, #tpu.memory_space<vmem>>, vector<128x8xf32>
    %cst_19 = arith.constant dense<0.000000e+00> : vector<32x8xf32>
    %16 = tpu.matmul %14, %15, %cst_19 {dimension_numbers = #tpu.dot_dimension_numbers<[1], [0], [0], [1], [0, 0, 1, 1], [], []>} : vector<32x128xf32>, vector<128x8xf32>, vector<32x8xf32> -> vector<32x8xf32>
    %cst_20 = arith.constant 6.250000e-02 : f32
    %17 = vector.broadcast %cst_20 : f32 to vector<32x8xf32>
    %18 = arith.mulf %16, %17 : vector<32x8xf32>
    %c0_21 = arith.constant 0 : index
    %c0_22 = arith.constant 0 : index
    %19 = vector.load %arg6[%c0_21, %c0_22] : memref<8x128xf32, #tpu.memory_space<vmem>>, vector<8x128xf32>
    %cst_23 = arith.constant dense<0.000000e+00> : vector<32x128xf32>
    %20 = tpu.matmul %18, %19, %cst_23 {dimension_numbers = #tpu.dot_dimension_numbers<[1], [0], [0], [1], [0, 0, 1, 1], [], []>} : vector<32x8xf32>, vector<8x128xf32>, vector<32x128xf32> -> vector<32x128xf32>
    %21 = arith.subf %14, %20 : vector<32x128xf32>
    %22 = arith.mulf %21, %21 : vector<32x128xf32>
    %c0_24 = arith.constant 0 : index
    %c0_25 = arith.constant 0 : index
    %23 = vector.load %arg5[%c0_24, %c0_25] : memref<128x8xf32, #tpu.memory_space<vmem>>, vector<128x8xf32>
    %cst_26 = arith.constant dense<0.000000e+00> : vector<32x8xf32>
    %24 = tpu.matmul %22, %23, %cst_26 {dimension_numbers = #tpu.dot_dimension_numbers<[1], [0], [0], [1], [0, 0, 1, 1], [], []>} : vector<32x128xf32>, vector<128x8xf32>, vector<32x8xf32> -> vector<32x8xf32>
    %cst_27 = arith.constant 6.250000e-02 : f32
    %25 = vector.broadcast %cst_27 : f32 to vector<32x8xf32>
    %26 = arith.mulf %24, %25 : vector<32x8xf32>
    %cst_28 = arith.constant 0.000000e+00 : f32
    %27 = vector.broadcast %cst_28 : f32 to vector<32x8xf32>
    %28 = arith.maximumf %26, %27 : vector<32x8xf32>
    %c0_29 = arith.constant 0 : index
    %c0_30 = arith.constant 0 : index
    %29 = vector.load %arg4[%c0_29, %c0_30] : memref<32x2xf32, #tpu.memory_space<vmem>>, vector<32x1xf32>
    %cst_31 = arith.constant 9.99999974E-6 : f32
    %30 = vector.broadcast %cst_31 : f32 to vector<32x8xf32>
    %31 = arith.addf %28, %30 : vector<32x8xf32>
    %32 = math.rsqrt %31 : vector<32x8xf32>
    %33 = vector.broadcast %29 : vector<32x1xf32> to vector<32x8xf32>
    %34 = arith.mulf %33, %32 : vector<32x8xf32>
    %c0_32 = arith.constant 0 : index
    %c0_33 = arith.constant 0 : index
    %35 = vector.load %arg6[%c0_32, %c0_33] : memref<8x128xf32, #tpu.memory_space<vmem>>, vector<8x128xf32>
    %cst_34 = arith.constant dense<0.000000e+00> : vector<32x128xf32>
    %36 = tpu.matmul %34, %35, %cst_34 {dimension_numbers = #tpu.dot_dimension_numbers<[1], [0], [0], [1], [0, 0, 1, 1], [], []>} : vector<32x8xf32>, vector<8x128xf32>, vector<32x128xf32> -> vector<32x128xf32>
    %37 = arith.mulf %21, %36 : vector<32x128xf32>
    %c0_35 = arith.constant 0 : index
    %c1_36 = arith.constant 1 : index
    %38 = vector.load %arg4[%c0_35, %c1_36] : memref<32x2xf32, #tpu.memory_space<vmem>>, vector<32x1xf32>
    %39 = vector.broadcast %38 : vector<32x1xf32> to vector<32x128xf32>
    %40 = arith.addf %37, %39 : vector<32x128xf32>
    %cst_37 = arith.constant 0.000000e+00 : f32
    %41 = vector.broadcast %cst_37 : f32 to vector<32x128xf32>
    %42 = arith.cmpf oge, %40, %41 : vector<32x128xf32>
    %cst_38 = arith.constant 2.000000e-01 : f32
    %43 = vector.broadcast %cst_38 : f32 to vector<32x128xf32>
    %44 = arith.mulf %43, %40 : vector<32x128xf32>
    %45 = arith.select %42, %40, %44 : vector<32x128xi1>, vector<32x128xf32>
    %46 = arith.truncf %45 : vector<32x128xf32> to vector<32x128xbf16>
    %c0_39 = arith.constant 0 : index
    %c0_40 = arith.constant 0 : index
    %c0_41 = arith.constant 0 : index
    %47 = vector.load %arg7[%c0_39, %c0_40, %c0_41] : memref<1x32x128xbf16, #tpu.memory_space<vmem>>, vector<1x32x128xbf16>
    %48 = vector.shape_cast %47 : vector<1x32x128xbf16> to vector<32x128xbf16>
    %49 = vector.shape_cast %46 : vector<32x128xbf16> to vector<1x32x128xbf16>
    tpu.vector_store %arg7[%c0_39, %c0_40, %c0_41], %49 {strides = array<i32>} : memref<1x32x128xbf16, #tpu.memory_space<vmem>>, vector<1x32x128xbf16>,
    return
  }
  func.func @transform_0(%arg0: i32, %arg1: i32) -> (i32, i32, i32) {
    %c0_i32 = arith.constant 0 : i32
    %c0_i32_0 = arith.constant 0 : i32
    %c0_i32_1 = arith.constant 0 : i32
    return %arg0, %c0_i32, %c0_i32_0 : i32, i32, i32
  }
  func.func @transform_1(%arg0: i32, %arg1: i32) -> (i32, i32) {
    %c0_i32 = arith.constant 0 : i32
    %c0_i32_0 = arith.constant 0 : i32
    return %arg1, %c0_i32 : i32, i32
  }
  func.func @transform_2(%arg0: i32, %arg1: i32) -> (i32, i32) {
    %c0_i32 = arith.constant 0 : i32
    %c0_i32_0 = arith.constant 0 : i32
    return %arg1, %c0_i32 : i32, i32
  }
  func.func @transform_3(%arg0: i32, %arg1: i32) -> (i32, i32) {
    %c0_i32 = arith.constant 0 : i32
    %c0_i32_0 = arith.constant 0 : i32
    %c0_i32_1 = arith.constant 0 : i32
    return %c0_i32, %c0_i32_0 : i32, i32
  }
  func.func @transform_4(%arg0: i32, %arg1: i32) -> (i32, i32) {
    %c0_i32 = arith.constant 0 : i32
    %c0_i32_0 = arith.constant 0 : i32
    %c0_i32_1 = arith.constant 0 : i32
    return %c0_i32, %c0_i32_0 : i32, i32
  }
  func.func @transform_5(%arg0: i32, %arg1: i32) -> (i32, i32, i32) {
    %c0_i32 = arith.constant 0 : i32
    %c0_i32_0 = arith.constant 0 : i32
    return %arg0, %arg1, %c0_i32 : i32, i32, i32
  }
}

module attributes {stable_mosaic.version = 11 : i64} {
  func.func @fc_heads_kernel(%arg0: i32, %arg1: memref<2x512xbf16, #tpu.memory_space<vmem>>, %arg2: memref<512x64xbf16, #tpu.memory_space<vmem>>, %arg3: memref<1x64xf32, #tpu.memory_space<vmem>>, %arg4: memref<64x5xbf16, #tpu.memory_space<vmem>>, %arg5: memref<1x5xf32, #tpu.memory_space<vmem>>, %arg6: memref<2x1xf32, #tpu.memory_space<vmem>>, %arg7: memref<2x4xf32, #tpu.memory_space<vmem>>, %arg8: memref<2x64xf32, #tpu.memory_space<vmem>>) attributes {dimension_semantics = [#tpu.dimension_semantics<arbitrary>], iteration_bounds = array<i64: 1>, scalar_prefetch = 0 : i64, scratch_operands = 1 : i64, tpu.core_type = #tpu.core_type<tc>, window_params = [{transform_indices = @transform_0, window_bounds = array<i64: 2, 512>}, {transform_indices = @transform_1, window_bounds = array<i64: 512, 64>}, {pipeline_mode = #tpu.pipeline_mode<synchronous>, transform_indices = @transform_2, window_bounds = array<i64: 1, 64>}, {pipeline_mode = #tpu.pipeline_mode<synchronous>, transform_indices = @transform_3, window_bounds = array<i64: 64, 5>}, {pipeline_mode = #tpu.pipeline_mode<synchronous>, transform_indices = @transform_4, window_bounds = array<i64: 1, 5>}, {pipeline_mode = #tpu.pipeline_mode<synchronous>, transform_indices = @transform_5, window_bounds = array<i64: 2, 1>}, {pipeline_mode = #tpu.pipeline_mode<synchronous>, transform_indices = @transform_6, window_bounds = array<i64: 2, 4>}]} {
    %c0_i32 = arith.constant 0 : i32
    %0 = arith.cmpi eq, %arg0, %c0_i32 : i32
    %1 = arith.extui %0 : i1 to i32
    %c0_i32_0 = arith.constant 0 : i32
    %2 = arith.cmpi ne, %1, %c0_i32_0 : i32
    scf.if %2 {
      %cst_10 = arith.constant 0.000000e+00 : f32
      %12 = vector.broadcast %cst_10 : f32 to vector<2x64xf32>
      %c0_11 = arith.constant 0 : index
      %c0_12 = arith.constant 0 : index
      %13 = vector.load %arg8[%c0_11, %c0_12] : memref<2x64xf32, #tpu.memory_space<vmem>>, vector<2x64xf32>
      tpu.vector_store %arg8[%c0_11, %c0_12], %12 {strides = array<i32>} : memref<2x64xf32, #tpu.memory_space<vmem>>, vector<2x64xf32>,
    } else {
    }
    %c0 = arith.constant 0 : index
    %c0_1 = arith.constant 0 : index
    %3 = vector.load %arg8[%c0, %c0_1] : memref<2x64xf32, #tpu.memory_space<vmem>>, vector<2x64xf32>
    %c0_2 = arith.constant 0 : index
    %c0_3 = arith.constant 0 : index
    %4 = vector.load %arg1[%c0_2, %c0_3] : memref<2x512xbf16, #tpu.memory_space<vmem>>, vector<2x512xbf16>
    %c0_4 = arith.constant 0 : index
    %c0_5 = arith.constant 0 : index
    %5 = vector.load %arg2[%c0_4, %c0_5] : memref<512x64xbf16, #tpu.memory_space<vmem>>, vector<512x64xbf16>
    %cst = arith.constant dense<0.000000e+00> : vector<2x64xf32>
    %6 = tpu.matmul %4, %5, %cst {dimension_numbers = #tpu.dot_dimension_numbers<[1], [0], [0], [1], [0, 0, 1, 1], [], []>} : vector<2x512xbf16>, vector<512x64xbf16>, vector<2x64xf32> -> vector<2x64xf32>
    %7 = arith.addf %3, %6 : vector<2x64xf32>
    %c0_6 = arith.constant 0 : index
    %c0_7 = arith.constant 0 : index
    %8 = vector.load %arg8[%c0_6, %c0_7] : memref<2x64xf32, #tpu.memory_space<vmem>>, vector<2x64xf32>
    tpu.vector_store %arg8[%c0_6, %c0_7], %7 {strides = array<i32>} : memref<2x64xf32, #tpu.memory_space<vmem>>, vector<2x64xf32>,
    %c0_i32_8 = arith.constant 0 : i32
    %9 = arith.cmpi eq, %arg0, %c0_i32_8 : i32
    %10 = arith.extui %9 : i1 to i32
    %c0_i32_9 = arith.constant 0 : i32
    %11 = arith.cmpi ne, %10, %c0_i32_9 : i32
    scf.if %11 {
      %c0_10 = arith.constant 0 : index
      %c0_11 = arith.constant 0 : index
      %12 = vector.load %arg8[%c0_10, %c0_11] : memref<2x64xf32, #tpu.memory_space<vmem>>, vector<2x64xf32>
      %c0_12 = arith.constant 0 : index
      %c0_13 = arith.constant 0 : index
      %13 = vector.load %arg3[%c0_12, %c0_13] : memref<1x64xf32, #tpu.memory_space<vmem>>, vector<1x64xf32>
      %14 = vector.broadcast %13 : vector<1x64xf32> to vector<2x64xf32>
      %15 = arith.addf %12, %14 : vector<2x64xf32>
      %cst_14 = arith.constant 0.000000e+00 : f32
      %16 = vector.broadcast %cst_14 : f32 to vector<2x64xf32>
      %17 = arith.cmpf oge, %15, %16 : vector<2x64xf32>
      %cst_15 = arith.constant 2.000000e-01 : f32
      %18 = vector.broadcast %cst_15 : f32 to vector<2x64xf32>
      %19 = arith.mulf %18, %15 : vector<2x64xf32>
      %20 = arith.select %17, %15, %19 : vector<2x64xi1>, vector<2x64xf32>
      %21 = arith.truncf %20 : vector<2x64xf32> to vector<2x64xbf16>
      %c0_16 = arith.constant 0 : index
      %c0_17 = arith.constant 0 : index
      %22 = vector.load %arg4[%c0_16, %c0_17] : memref<64x5xbf16, #tpu.memory_space<vmem>>, vector<64x5xbf16>
      %cst_18 = arith.constant dense<0.000000e+00> : vector<2x5xf32>
      %23 = tpu.matmul %21, %22, %cst_18 {dimension_numbers = #tpu.dot_dimension_numbers<[1], [0], [0], [1], [0, 0, 1, 1], [], []>} : vector<2x64xbf16>, vector<64x5xbf16>, vector<2x5xf32> -> vector<2x5xf32>
      %c0_19 = arith.constant 0 : index
      %c0_20 = arith.constant 0 : index
      %24 = vector.load %arg5[%c0_19, %c0_20] : memref<1x5xf32, #tpu.memory_space<vmem>>, vector<1x5xf32>
      %25 = vector.broadcast %24 : vector<1x5xf32> to vector<2x5xf32>
      %26 = arith.addf %23, %25 : vector<2x5xf32>
      %27 = vector.extract_strided_slice %26 {offsets = [0, 0], sizes = [2, 1], strides = [1, 1]} : vector<2x5xf32> to vector<2x1xf32>
      %c0_21 = arith.constant 0 : index
      %c0_22 = arith.constant 0 : index
      %28 = vector.load %arg6[%c0_21, %c0_22] : memref<2x1xf32, #tpu.memory_space<vmem>>, vector<2x1xf32>
      tpu.vector_store %arg6[%c0_21, %c0_22], %27 {strides = array<i32>} : memref<2x1xf32, #tpu.memory_space<vmem>>, vector<2x1xf32>,
      %29 = vector.extract_strided_slice %26 {offsets = [0, 1], sizes = [2, 4], strides = [1, 1]} : vector<2x5xf32> to vector<2x4xf32>
      %30 = arith.negf %29 : vector<2x4xf32>
      %31 = math.exp %30 : vector<2x4xf32>
      %cst_23 = arith.constant 1.000000e+00 : f32
      %32 = vector.broadcast %cst_23 : f32 to vector<2x4xf32>
      %33 = arith.addf %32, %31 : vector<2x4xf32>
      %34 = arith.divf %32, %33 : vector<2x4xf32>
      %c0_24 = arith.constant 0 : index
      %c0_25 = arith.constant 0 : index
      %35 = vector.load %arg7[%c0_24, %c0_25] : memref<2x4xf32, #tpu.memory_space<vmem>>, vector<2x4xf32>
      tpu.vector_store %arg7[%c0_24, %c0_25], %34 {strides = array<i32>} : memref<2x4xf32, #tpu.memory_space<vmem>>, vector<2x4xf32>,
    } else {
    }
    return
  }
  func.func @transform_0(%arg0: i32) -> (i32, i32) {
    %c0_i32 = arith.constant 0 : i32
    %c0_i32_0 = arith.constant 0 : i32
    return %c0_i32, %arg0 : i32, i32
  }
  func.func @transform_1(%arg0: i32) -> (i32, i32) {
    %c0_i32 = arith.constant 0 : i32
    %c0_i32_0 = arith.constant 0 : i32
    return %arg0, %c0_i32 : i32, i32
  }
  func.func @transform_2(%arg0: i32) -> (i32, i32) {
    %c0_i32 = arith.constant 0 : i32
    %c0_i32_0 = arith.constant 0 : i32
    %c0_i32_1 = arith.constant 0 : i32
    return %c0_i32, %c0_i32_0 : i32, i32
  }
  func.func @transform_3(%arg0: i32) -> (i32, i32) {
    %c0_i32 = arith.constant 0 : i32
    %c0_i32_0 = arith.constant 0 : i32
    %c0_i32_1 = arith.constant 0 : i32
    return %c0_i32, %c0_i32_0 : i32, i32
  }
  func.func @transform_4(%arg0: i32) -> (i32, i32) {
    %c0_i32 = arith.constant 0 : i32
    %c0_i32_0 = arith.constant 0 : i32
    %c0_i32_1 = arith.constant 0 : i32
    return %c0_i32, %c0_i32_0 : i32, i32
  }
  func.func @transform_5(%arg0: i32) -> (i32, i32) {
    %c0_i32 = arith.constant 0 : i32
    %c0_i32_0 = arith.constant 0 : i32
    %c0_i32_1 = arith.constant 0 : i32
    return %c0_i32, %c0_i32_0 : i32, i32
  }
  func.func @transform_6(%arg0: i32) -> (i32, i32) {
    %c0_i32 = arith.constant 0 : i32
    %c0_i32_0 = arith.constant 0 : i32
    %c0_i32_1 = arith.constant 0 : i32
    return %c0_i32, %c0_i32_0 : i32, i32
  }
}

</mosaic_0001>

<bundles_post_ra>
// kernel: discriminator_forward.4
= control target key start
LH: loop header
LB: loop body
LE: loop exit
PB: predicated region body
PF: predicated region fallthrough
CT: control target
= control target key end

     0   :  { %s1765_s18 = smov 0   ;;  %s1767_s19 = smov 0   ;;  %s2114_s0 = inlined_call_operand.vmem [shape: bf16[2,16,512], index: 0, kind: input, shape index: {}]   ;;  %s2115_s1 = inlined_call_operand.vmem [shape: bf16[8,64], index: 1, kind: input, shape index: {}]   ;;  %s2116_s2 = inlined_call_operand.vmem [shape: f32[8,2], index: 2, kind: input, shape index: {}]   ;;  %s2117_s3 = inlined_call_operand.vmem [shape: f32[384,8], index: 3, kind: input, shape index: {}]   ;;  %s2118_s4 = inlined_call_operand.vmem [shape: f32[8,384], index: 4, kind: input, shape index: {}]   ;;  %s2119_s5 = inlined_call_operand.vmem [shape: bf16[2,8,384], index: 5, kind: output, shape index: {}]  }
   0x1   :  { %s1769_s20 = smov 0  }
   0x2 LB: > { %s24_s21 = sadd.s32 1, %s1721_s19  ;;  %p1309_p0 = scmp.ge.s32.totalorder %s1725_s20, 1  ;;  %s1725_s20 = sphi %s1769_s20, %s15_s20   ;;  %s1721_s19 = sphi %s1767_s19, %s2121_s19   ;;  %s1717_s18 = sphi %s1765_s18, %s2120_s18  }
   0x3   : > { %p25_p1 = scmp.ge.s32.totalorder %s24_s21, 2  ;;  %p219_p2 = scmp.lt.s32.totalorder %s1725_s20, 3 }
   0x5   : > { %s2123_s21 = smov (%p25_p1, %s24_s21), 0  ;;  %p220_p3 = pnand %p1309_p0, %p219_p2 }
   0x6   : > { %p259_p4 = scmp.lt.s32.totalorder (!%p220_p3), %s1717_s18, 1  ;;  %v1727_v0 = vmov (!%p220_p3), 0.0   ;;  %s1728_s26 = smov (!%p220_p3), 127   ;;  %v1730_v6 = vmov (!%p220_p3), 0   ;;  %vm1732_vm0 = vmmov (!%p220_p3), 0   ;;  %vm333_vm1 = vcmask (!%p220_p3), 1039360  }
   0x7   : > { %223 = sbr.rel (%p220_p3) target bundleno = 1266 (0x4f2), region = 40  ;;  %1454 = vmatprep.subr.bf16.mxu1 (!%p220_p3), %v1727_v0  ;;  %s1729_s27 = smov (!%p220_p3), 111   ;;  %468 = vmatprep.mubr.bf16.mxu0 (!%p220_p3), %v1730_v6  ;;  %vm371_vm2 = vcmask (!%p220_p3), 908288   ;;  %v533_v20 = vld [vmem:[%s2117_s3 + $0x80] sm:$0xff] (!%p220_p3)  ;;  %v534_v21 = vld [vmem:[%s2117_s3 + $0x88] sm:$0xff] (!%p220_p3)  ;;  %vm409_vm3 = vcmask (!%p220_p3), 900096  }
   0x8   : > { %1691 = vset.pattern.permute.xlu0 (!%p220_p3), %v1730_v6  ;;  %s1731_s28 = smov (!%p220_p3), 110   ;;  %1462 = vmatprep.mubr.msk.bf16.mxu1 (!%p220_p3), %vm1732_vm0, %v1727_v0  ;;  %v1805_v23 = vpack.c.bf16 (!%p220_p3), %v534_v21, %v533_v20  ;;  %v517_v24 = vld [vmem:[%s2117_s3] sm:$0xff] (!%p220_p3)  ;;  %v518_v25 = vld [vmem:[%s2117_s3 + $0x8] sm:$0xff] (!%p220_p3)  ;;  %v535_v28 = vld [vmem:[%s2117_s3 + $0x90] sm:$0xff] (!%p220_p3)  ;;  %vm432_vm4 = vcmask (!%p220_p3), 523264   ;;  %v1733_v51 = vmov (!%p220_p3), 0.0|0.0  }
   0x9   : > { %v536_v29 = vld [vmem:[%s2117_s3 + $0x98] sm:$0xff] (!%p220_p3)  ;;  %v419_v31 = vld [vmem:[%s2115_s1] sm:$0xf] (!%p220_p3)  ;;  %v1824_v32 = vpack.c.bf16 (!%p220_p3), %v518_v25, %v517_v24  ;;  %v519_v35 = vld [vmem:[%s2117_s3 + $0x10] sm:$0xff] (!%p220_p3)  ;;  %vm709_vm5 = vcmask (!%p220_p3), 64512  }
   0xa   : > { %v1827_v34 = vpack.c.bf16 (!%p220_p3), %v536_v29, %v535_v28  ;;  %v520_v36 = vld [vmem:[%s2117_s3 + $0x18] sm:$0xff] (!%p220_p3)  ;;  %v537_v38 = vld [vmem:[%s2117_s3 + $0xa0] sm:$0xff] (!%p220_p3)  ;;  %v538_v39 = vld [vmem:[%s2117_s3 + $0xa8] sm:$0xff] (!%p220_p3) }
   0xb   : > { %v1845_v41 = vpack.c.bf16 (!%p220_p3), %v520_v36, %v519_v35  ;;  %v549_v42 = vld [vmem:[%s2117_s3 + $0x100] sm:$0xff] (!%p220_p3)  ;;  %v550_v43 = vld [vmem:[%s2117_s3 + $0x108] sm:$0xff] (!%p220_p3)  ;;  %v1854_v44 = vpack.c.bf16 (!%p220_p3), %v538_v39, %v537_v38  ;;  %v539_v48 = vld [vmem:[%s2117_s3 + $0xb0] sm:$0xff] (!%p220_p3) }
   0xc   : > { %v521_v45 = vld [vmem:[%s2117_s3 + $0x20] sm:$0xff] (!%p220_p3)  ;;  %v522_v46 = vld [vmem:[%s2117_s3 + $0x28] sm:$0xff] (!%p220_p3)  ;;  %v540_v49 = vld [vmem:[%s2117_s3 + $0xb8] sm:$0xff] (!%p220_p3)  ;;  %v1869_v50 = vpack.c.bf16 (!%p220_p3), %v550_v43, %v549_v42 }
   0xd   : > { %v1873_v52 = vpack.c.bf16 (!%p220_p3), %v522_v46, %v521_v45  ;;  %v551_v53 = vld [vmem:[%s2117_s3 + $0x110] sm:$0xff] (!%p220_p3)  ;;  %v552_v54 = vld [vmem:[%s2117_s3 + $0x118] sm:$0xff] (!%p220_p3)  ;;  %v1882_v55 = vpack.c.bf16 (!%p220_p3), %v540_v49, %v539_v48  ;;  %v541_v58 = vld [vmem:[%s2117_s3 + $0xc0] sm:$0xff] (!%p220_p3) }
   0xe   : > { %s2125_s18 = smov (!%p259_p4, %s1717_s18), 1  ;;  %v523_v56 = vld [vmem:[%s2117_s3 + $0x30] sm:$0xff]  ;;  %v524_v57 = vld [vmem:[%s2117_s3 + $0x38] sm:$0xff]  ;;  %v542_v59 = vld [vmem:[%s2117_s3 + $0xc8] sm:$0xff]  ;;  %v1898_v60 = vpack.c.bf16 %v552_v54, %v551_v53 }
   0xf   : > { %s1338_s22 = sshll.u32 %s2125_s18, 5  ;;  %v1904_v61 = vpack.c.bf16 %v524_v57, %v523_v56  ;;  %v553_v62 = vld [vmem:[%s2117_s3 + $0x120] sm:$0xff]  ;;  %v554_v63 = vld [vmem:[%s2117_s3 + $0x128] sm:$0xff]  ;;  %v548_v24 = vld [vmem:[%s2117_s3 + $0xf8] sm:$0xff]  ;;  %s1658_s30 = smul.u32 12, %s2125_s18 }
  0x10   : > { %s263_s25 = scalar_lea.vmem %s2114_s0, %s1338_s22  ;;  %v1928_v6 = vpack.c.bf16 %v554_v63, %v553_v62  ;;  %v529_v20 = vld [vmem:[%s2117_s3 + $0x60] sm:$0xff]  ;;  %v530_v21 = vld [vmem:[%s2117_s3 + $0x68] sm:$0xff]  ;;  %v560_v28 = vld [vmem:[%s2117_s3 + $0x158] sm:$0xff] }
  0x11   : > { %v1694_v1 = vld [vmem:[%s263_s25 + $0x4] ss:$16 sps:$4 sm:$0xff]   ;;  %v1696_v2 = vld [vmem:[%s263_s25] ss:$16 sps:$4 sm:$0xff]   ;;  %v1697_v3 = vld [vmem:[%s263_s25 + $0x8] ss:$16 sps:$4 sm:$0xff]   ;;  %s280_s8 = scalar_lea.vmem %s2119_s5, %s1658_s30 }
  0x12   : > { %327 = vrot.lane.b32.xlu0 %v1694_v1, %s1728_s26  ;;  %436 = vmatprep.subr.bf16.mxu0 %v1694_v1  ;;  %v1700_v4 = vld [vmem:[%s263_s25 + $0x8] ss:$16 sps:$4 sm:$0xff]   ;;  %v1699_v5 = vld [vmem:[%s263_s25 + $0xc] ss:$16 sps:$4 sm:$0xff]   ;;  %v561_v36 = vld [vmem:[%s2117_s3 + $0x160] sm:$0xff] }
  0x13   : > { %325 = vrot.lane.b32.xlu1 %v1696_v2, %s1728_s26  ;;  %437 = vmatpush1.bf16.msra.mxu0 %v1696_v2  ;;  %v563_v39 = vld [vmem:[%s2117_s3 + $0x170] sm:$0xff]  ;;  %v707_v56 = vld [vmem:[%s2118_s4 + $0x8] sm:$0xff]  ;;  %v2048_v57 = vld [vmem:[%s2118_s4] sm:$0xff] }
  0x14   : > { %1455 = vmatpush3.bf16.msra.mxu1 %v1700_v4  ;;  %v543_v4 = vld [vmem:[%s2117_s3 + $0xd0] sm:$0xff] }
  0x15   : > { %1456 = vmatprep.subr.bf16.mxu1 %v1727_v0 }
  0x16   : > { %329 = vrot.lane.b32.xlu0 %v1697_v3, %s1728_s26 }
  0x17   : > { %365 = vrot.lane.b32.xlu1 %v1694_v1, %s1729_s27 }
  0x1a   : > { %367 = vrot.lane.b32.xlu0 %v1697_v3, %s1729_s27 }
  0x1b   : > { %363 = vrot.lane.b32.xlu1 %v1696_v2, %s1729_s27 }
  0x1e   : > { %331 = vrot.lane.b32.xlu0 %v1699_v5, %s1728_s26 }
  0x1f   : > { %403 = vrot.lane.b32.xlu1 %v1694_v1, %s1731_s28  ;;  %v1913_v1 = vpack.c.bf16 %v542_v59, %v541_v58  ;;  %v708_v58 = vld [vmem:[%s2118_s4 + $0x10] sm:$0xff] }
  0x22   : > { %405 = vrot.lane.b32.xlu0 %v1697_v3, %s1731_s28  ;;  %v526_v3 = vld [vmem:[%s2117_s3 + $0x48] sm:$0xff] }
  0x23   : > { %401 = vrot.lane.b32.xlu1 %v1696_v2, %s1731_s28  ;;  %v525_v2 = vld [vmem:[%s2117_s3 + $0x40] sm:$0xff] }
  0x26   : > { %369 = vrot.lane.b32.xlu0 %v1699_v5, %s1729_s27 }
  0x27   : > { %407 = vrot.lane.b32.xlu1 %v1699_v5, %s1731_s28  ;;  %v544_v5 = vld [vmem:[%s2117_s3 + $0xd8] sm:$0xff] }
  0x84   : > { %v328_v7 = vpop.permute.xlu0 %327 }
  0x85   : > { %v326_v8 = vpop.permute.xlu1 %325 }
  0x86   : > { %v334_v12 = vsel %vm333_vm1, %v326_v8, %v328_v7  ;;  %v555_v8 = vld [vmem:[%s2117_s3 + $0x130] sm:$0xff] }
  0x88   : > { %v330_v9 = vpop.permute.xlu0 %329 }
  0x89   : > { %v366_v10 = vpop.permute.xlu1 %365  ;;  %v335_v11 = vsel %vm333_vm1, %v328_v7, %v330_v9  ;;  %v1932_v7 = vpack.c.bf16 %v526_v3, %v525_v2 }
  0x8a   : > { %438 = vmatprep.subr.bf16.mxu0 %v335_v11  ;;  %v527_v11 = vld [vmem:[%s2117_s3 + $0x50] sm:$0xff] }
  0x8b   : > { %439 = vmatpush1.bf16.msra.mxu0 %v334_v12  ;;  %v528_v12 = vld [vmem:[%s2117_s3 + $0x58] sm:$0xff] }
  0x8c   : > { %v368_v13 = vpop.permute.xlu0 %367 }
  0x8d   : > { %v364_v14 = vpop.permute.xlu1 %363  ;;  %v373_v15 = vsel %vm371_vm2, %v366_v10, %v368_v13 }
  0x8e   : > { %440 = vmatprep.subr.bf16.mxu0 %v373_v15  ;;  %v372_v16 = vsel %vm371_vm2, %v364_v14, %v366_v10  ;;  %v1941_v10 = vpack.c.bf16 %v544_v5, %v543_v4  ;;  %v546_v14 = vld [vmem:[%s2117_s3 + $0xe8] sm:$0xff] }
  0x8f   : > { %441 = vmatpush1.bf16.msra.mxu0 %v372_v16  ;;  %v1960_v16 = vpack.c.bf16 %v528_v12, %v527_v11 }
  0x90   : > { %v332_v17 = vpop.permute.xlu0 %331 }
  0x91   : > { %v404_v18 = vpop.permute.xlu1 %403  ;;  %v336_v19 = vsel %vm333_vm1, %v330_v9, %v332_v17  ;;  %v556_v9 = vld [vmem:[%s2117_s3 + $0x138] sm:$0xff]  ;;  %v557_v17 = vld [vmem:[%s2117_s3 + $0x140] sm:$0xff] }
  0x92   : > { %1457 = vmatpush3.bf16.msra.mxu1 %v336_v19  ;;  %v1956_v15 = vpack.c.bf16 %v556_v9, %v555_v8 }
  0x93   : > { %1458 = vmatprep.subr.bf16.mxu1 %v1727_v0 }
  0x94   : > { %v406_v22 = vpop.permute.xlu0 %405 }
  0x95   : > { %v402_v26 = vpop.permute.xlu1 %401  ;;  %v411_v27 = vsel %vm409_vm3, %v404_v18, %v406_v22 }
  0x96   : > { %442 = vmatprep.subr.bf16.mxu0 %v411_v27  ;;  %v410_v30 = vsel %vm409_vm3, %v402_v26, %v404_v18  ;;  %v558_v18 = vld [vmem:[%s2117_s3 + $0x148] sm:$0xff]  ;;  %v1988_v26 = vpack.c.bf16 %v530_v21, %v529_v20  ;;  %v559_v27 = vld [vmem:[%s2117_s3 + $0x150] sm:$0xff] }
  0x97   : > { %443 = vmatpush1.bf16.msra.mxu0 %v410_v30  ;;  %v1984_v25 = vpack.c.bf16 %v558_v18, %v557_v17  ;;  %v2000_v30 = vpack.c.bf16 %v560_v28, %v559_v27 }
  0x98   : > { %v370_v33 = vpop.permute.xlu0 %369  ;;  %1547 = vmatprep.subr.bf16.mxu0 %v1805_v23 }
  0x99   : > { %v374_v37 = vsel %vm371_vm2, %v368_v13, %v370_v33  ;;  %v408_v40 = vpop.permute.xlu1 %407  ;;  %v545_v13 = vld [vmem:[%s2117_s3 + $0xe0] sm:$0xff]  ;;  %v532_v33 = vld [vmem:[%s2117_s3 + $0x78] sm:$0xff] }
  0x9a   : > { %1328 = vmatmul.mubr.msk.bf16.vlgmr.msra.gmra.mrb[0].mxu0 %vm432_vm4, %v419_v31  ;;  %1459 = vmatpush3.bf16.msra.mxu1 %v374_v37  ;;  %v412_v47 = vsel %vm409_vm3, %v406_v22, %v408_v40  ;;  %v1969_v19 = vpack.c.bf16 %v546_v14, %v545_v13  ;;  %v547_v22 = vld [vmem:[%s2117_s3 + $0xf0] sm:$0xff]  ;;  %v562_v37 = vld [vmem:[%s2117_s3 + $0x168] sm:$0xff]  ;;  %v564_v40 = vld [vmem:[%s2117_s3 + $0x178] sm:$0xff] }
  0x9b   : > { %1460 = vmatprep.subr.bf16.mxu1 %v1727_v0  ;;  %1549 = vmatpush3.bf16.msra.mxu0 %v1824_v32  ;;  %v1997_v29 = vpack.c.bf16 %v548_v24, %v547_v22  ;;  %v2021_v38 = vpack.c.bf16 %v562_v37, %v561_v36  ;;  %v1600_v42 = vpack.c.bf16 %v564_v40, %v563_v39 }
  0x9c   : > { %1551 = vmatprep.subr.bf16.mxu0 %v1827_v34 }
  0x9e   : > { %1461 = vmatpush3.bf16.msra.mxu1 %v412_v47 }
  0x9f   : > { %1553 = vmatpush3.bf16.msra.mxu0 %v1845_v41  ;;  %1578 = vmatprep.subr.bf16.mxu1 %v1733_v51 }
  0xa0   : > { %1555 = vmatprep.subr.bf16.mxu0 %v1854_v44 }
  0xa1   : > { %1463 = vmatmul.mubr.msk.bf16.vlgmr.msra.gmra.mrb[0].mxu1 %vm432_vm4, %v419_v31  ;;  %v531_v31 = vld [vmem:[%s2117_s3 + $0x70] sm:$0xff] }
  0xa2   : > { %1580 = vmatpush3.bf16.msra.mxu1 %v1869_v50  ;;  %1498 = vmatprep.mubr.msk.f32.mxu1 %vm1732_vm0, %v1727_v0  ;;  %v2013_v35 = vpack.c.bf16 %v532_v33, %v531_v31 }
  0xa3   : > { %1557 = vmatpush3.bf16.msra.mxu0 %v1873_v52  ;;  %1581 = vmatprep.subr.bf16.mxu1 %v1733_v51 }
  0xa4   : > { %1559 = vmatprep.subr.bf16.mxu0 %v1882_v55 }
  0xa6   : > { %1583 = vmatpush3.bf16.msra.mxu1 %v1898_v60 }
  0xa7   : > { %1561 = vmatpush3.bf16.msra.mxu0 %v1904_v61  ;;  %1584 = vmatprep.subr.bf16.mxu1 %v1733_v51 }
  0xa8   : > { %1563 = vmatprep.subr.bf16.mxu0 %v1913_v1 }
  0xaa   : > { %1586 = vmatpush3.bf16.msra.mxu1 %v1928_v6 }
  0xab   : > { %1565 = vmatpush3.bf16.msra.mxu0 %v1932_v7  ;;  %1587 = vmatprep.subr.bf16.mxu1 %v1733_v51 }
  0xac   : > { %1567 = vmatprep.subr.bf16.mxu0 %v1941_v10 }
  0xae   : > { %1589 = vmatpush3.bf16.msra.mxu1 %v1956_v15 }
  0xaf   : > { %1569 = vmatpush3.bf16.msra.mxu0 %v1960_v16  ;;  %1590 = vmatprep.subr.bf16.mxu1 %v1733_v51 }
  0xb0   : > { %1571 = vmatprep.subr.bf16.mxu0 %v1969_v19 }
  0xb2   : > { %1592 = vmatpush3.bf16.msra.mxu1 %v1984_v25 }
  0xb3   : > { %1573 = vmatpush3.bf16.msra.mxu0 %v1988_v26  ;;  %1593 = vmatprep.subr.bf16.mxu1 %v1733_v51 }
  0xb4   : > { %1575 = vmatprep.subr.bf16.mxu0 %v1997_v29 }
  0xb6   : > { %1595 = vmatpush3.bf16.msra.mxu1 %v2000_v30 }
  0xb7   : > { %1596 = vmatprep.subr.bf16.mxu1 %v1733_v51  ;;  %1577 = vmatpush3.bf16.msra.mxu0 %v2013_v35 }
  0xb8   : > { %713 = vmatprep.subr.mxu0 %v707_v56 }
  0xba   : > { %1598 = vmatpush3.bf16.msra.mxu1 %v2021_v38 }
  0xbb   : > { %1599 = vmatprep.subr.bf16.mxu1 %v1733_v51 }
  0xbe   : > { %1601 = vmatpush3.bf16.msra.mxu1 %v1600_v42 }
  0xbf   : > { %1501 = vmatprep.subr.mxu1 %v1727_v0 }
 0x16d   : > { %v2033_v43 = vpop.f32.mrb[0].mxu0 }
 0x16e   : > { %v2035_v45 = vpop.f32.mrb[1].mxu0 }
 0x16f   : > { %v474_v46 = vpop.f32.mrb[2].mxu0  ;;  %629 = vmatprep.mubr.f32.mxu0 %v2035_v45 }
 0x170   : > { %v475_v47 = vpop.f32.mrb[3].mxu0  ;;  %630 = vmatmul.mubr.f32.vlgmr.msra.gmra.mrb[4].mxu0 %v2033_v43 }
 0x171   : > { %777 = vmatprep.mubr.f32.mxu0 %v1727_v0  ;;  %714 = vmatpush1.msra.mxu0 %v2048_v57 }
 0x172   : > { %1603 = vmatprep.subr.bf16.mxu0 %v1805_v23  ;;  %v1002_v23 = vld [vmem:[%s2116_s2] sm:$0xff] }
 0x173   : > { %1007 = vperm.xlu0 %1691, %v1002_v23  }
 0x174   : > { %v511_v48 = vpop.f32.mrb[0].mxu1 }
 0x175   : > { %v1464_v49 = vpop.f32.mrb[1].mxu1  ;;  %1499 = vmatmul.mubr.f32.vlgmr.msra.gmra.mrb[4].mxu1 %v511_v48 }
 0x176   : > { %v514_v53 = vpop.f32.mrb[2].mxu1  ;;  %1503 = vmatprep.mubr.msk.f32.mxu1 %vm1732_vm0, %v1727_v0  ;;  %1502 = vmatpush3.msra.mxu1 %v708_v58 }
 0x177   : > { %v1465_v54 = vpop.f32.mrb[3].mxu1  ;;  %1634 = vmatprep.subr.bf16.mxu1 %v1733_v51 }
 0x243   : > { %v1378_v59 = vpop.f32.mrb[4].mxu0 }
 0x244   : > { %v1379_v62 = vpop.f32.mrb[5].mxu0 }
 0x245   : > { %v1380_v63 = vadd.f32 %v1379_v62, %v1378_v59 }
 0x248   : > { %v701_v2 = vpop.f32.mrb[4].mxu1 }
 0x249   : > { %v702_v3 = vadd.f32 %v1380_v63, %v701_v2  ;;  %v1500_v4 = vpop.f32.mrb[5].mxu1 }
 0x24b   : > { %v705_v5 = vmul.f32 0.00390625, %v702_v3 }
 0x24d   : > { %1330 = vmatmul.mubr.msk.f32.vlgmr.msra.gmra.mrb[6].mxu0 %vm709_vm5, %v705_v5  ;;  %1504 = vmatmul.mubr.msk.f32.vlgmr.msra.gmra.mrb[6].mxu1 %vm709_vm5, %v705_v5 }
 0x24e   : > { %1636 = vmatpush3.bf16.msra.mxu1 %v1869_v50  ;;  %1605 = vmatpush3.bf16.msra.mxu0 %v1824_v32 }
 0x24f   : > { %1637 = vmatprep.subr.bf16.mxu1 %v1733_v51  ;;  %1607 = vmatprep.subr.bf16.mxu0 %v1827_v34 }
 0x250   : > { %1538 = vmatprep.mubr.msk.f32.mxu1 %vm1732_vm0, %v1727_v0 }
 0x252   : > { %1639 = vmatpush3.bf16.msra.mxu1 %v1898_v60  ;;  %1609 = vmatpush3.bf16.msra.mxu0 %v1845_v41 }
 0x253   : > { %1640 = vmatprep.subr.bf16.mxu1 %v1733_v51  ;;  %1611 = vmatprep.subr.bf16.mxu0 %v1854_v44 }
 0x256   : > { %1642 = vmatpush3.bf16.msra.mxu1 %v1928_v6  ;;  %1613 = vmatpush3.bf16.msra.mxu0 %v1873_v52 }
 0x257   : > { %1643 = vmatprep.subr.bf16.mxu1 %v1733_v51  ;;  %1615 = vmatprep.subr.bf16.mxu0 %v1882_v55 }
 0x25a   : > { %1645 = vmatpush3.bf16.msra.mxu1 %v1956_v15  ;;  %1617 = vmatpush3.bf16.msra.mxu0 %v1904_v61  ;;  %v1008_v15 = vpop.permute.xlu0 %1007 }
 0x25b   : > { %1646 = vmatprep.subr.bf16.mxu1 %v1733_v51  ;;  %1619 = vmatprep.subr.bf16.mxu0 %v1913_v1  ;;  %v1734_v1 = vmov 1  }
 0x25c   : > { %1692 = vset.pattern.permute.xlu1 %v1734_v1  ;;  %1693 = vset.pattern.permute.xlu0 %v1734_v1 }
 0x25d   : > { %1159 = vperm.xlu1 %1692, %v1002_v23  }
 0x25e   : > { %1648 = vmatpush3.bf16.msra.mxu1 %v1984_v25  ;;  %1621 = vmatpush3.bf16.msra.mxu0 %v1932_v7 }
 0x25f   : > { %1649 = vmatprep.subr.bf16.mxu1 %v1733_v51  ;;  %1623 = vmatprep.subr.bf16.mxu0 %v1941_v10 }
 0x262   : > { %1651 = vmatpush3.bf16.msra.mxu1 %v2000_v30  ;;  %1625 = vmatpush3.bf16.msra.mxu0 %v1960_v16 }
 0x263   : > { %1652 = vmatprep.subr.bf16.mxu1 %v1733_v51  ;;  %1627 = vmatprep.subr.bf16.mxu0 %v1969_v19 }
 0x266   : > { %1654 = vmatpush3.bf16.msra.mxu1 %v2021_v38  ;;  %1629 = vmatpush3.bf16.msra.mxu0 %v1988_v26 }
 0x267   : > { %1655 = vmatprep.subr.bf16.mxu1 %v1733_v51  ;;  %1631 = vmatprep.subr.bf16.mxu0 %v1997_v29 }
 0x26a   : > { %1657 = vmatpush3.bf16.msra.mxu1 %v1600_v42  ;;  %1633 = vmatpush3.bf16.msra.mxu0 %v2013_v35 }
 0x26b   : > { %1014 = vmatprep.subr.mxu0 %v707_v56  ;;  %1541 = vmatprep.subr.mxu1 %v1727_v0 }
 0x320   : > { %v779_v32 = vpop.f32.mrb[6].mxu0  ;;  %v850_v34 = vpop.f32.mrb[6].mxu1 }
 0x321   : > { %v854_v41 = vsub.f32 %v2033_v43, %v779_v32  ;;  %v856_v44 = vsub.f32 %v511_v48, %v850_v34  ;;  %v781_v50 = vpop.f32.mrb[7].mxu0  ;;  %v1505_v51 = vpop.f32.mrb[7].mxu1 }
 0x322   : > { %v855_v52 = vsub.f32 %v2035_v45, %v781_v50 }
 0x323   : > { %v859_v55 = vmul.f32 %v856_v44, %v856_v44  ;;  %v857_v61 = vmul.f32 %v854_v41, %v854_v41 }
 0x324   : > { %v858_v60 = vmul.f32 %v855_v52, %v855_v52 }
 0x325   : > { %1539 = vmatmul.mubr.f32.vlgmr.msra.gmra.mrb[8].mxu1 %v859_v55 }
 0x326   : > { %924 = vmatprep.mubr.f32.mxu0 %v858_v60  ;;  %1542 = vmatpush3.msra.mxu1 %v708_v58 }
 0x327   : > { %925 = vmatmul.mubr.f32.vlgmr.msra.gmra.mrb[8].mxu0 %v857_v61  ;;  %1543 = vmatprep.mubr.msk.f32.mxu1 %vm1732_vm0, %v1727_v0 }
 0x328   : > { %1015 = vmatpush1.msra.mxu0 %v2048_v57  ;;  %1078 = vmatprep.mubr.f32.mxu0 %v1727_v0  ;;  %v1160_v0 = vpop.permute.xlu1 %1159 }
 0x3f8   : > { %v996_v6 = vpop.f32.mrb[8].mxu1 }
 0x3f9   : > { %v1540_v7 = vpop.f32.mrb[9].mxu1 }
 0x3fa   : > { %v1432_v8 = vpop.f32.mrb[8].mxu0 }
 0x3fb   : > { %v1433_v9 = vpop.f32.mrb[9].mxu0 }
 0x3fc   : > { %v1434_v10 = vadd.f32 %v1433_v9, %v1432_v8 }
 0x3fe   : > { %v997_v11 = vadd.f32 %v1434_v10, %v996_v6 }
 0x400   : > { %v1000_v12 = vmul.f32 0.00390625, %v997_v11 }
 0x402   : > { %v1001_v13 = vmax.f32 %v1000_v12, 0.0 }
 0x404   : > { %v1003_v14 = vadd.f32 1e-05, %v1001_v13 }
 0x406   : > { %1701 = vrsqrt.f32 %v1003_v14 }
 0x410   : > { %v1702_v16 = vpop.eup %1701 }
 0x411   : > { %v1010_v17 = vmul.f32 %v1702_v16, %v1008_v15 }
 0x413   : > { %1332 = vmatmul.mubr.msk.f32.vlgmr.msra.gmra.mrb[10].mxu0 %vm709_vm5, %v1010_v17  ;;  %1544 = vmatmul.mubr.msk.f32.vlgmr.msra.gmra.mrb[10].mxu1 %vm709_vm5, %v1010_v17 }
 0x4e6   : > { %v1080_v18 = vpop.f32.mrb[10].mxu0  ;;  %v1151_v19 = vpop.f32.mrb[10].mxu1 }
 0x4e7   : > { %v1155_v20 = vmul.f32 %v1080_v18, %v854_v41  ;;  %v1157_v21 = vmul.f32 %v1151_v19, %v856_v44  ;;  %v1082_v22 = vpop.f32.mrb[11].mxu0  ;;  %v1545_v24 = vpop.f32.mrb[11].mxu1 }
 0x4e8   : > { %v1156_v25 = vmul.f32 %v1082_v22, %v855_v52 }
 0x4e9   : > { %v1162_v26 = vadd.f32 %v1160_v0, %v1155_v20  ;;  %v1164_v27 = vadd.f32 %v1160_v0, %v1157_v21 }
 0x4ea   : > { %v1163_v28 = vadd.f32 %v1160_v0, %v1156_v25 }
 0x4eb   : > { %vm1165_vm6 = vcmp.ge.f32.partialorder %v1162_v26, 0.0  ;;  %vm1167_vm7 = vcmp.ge.f32.partialorder %v1164_v27, 0.0  ;;  %v1168_v29 = vmul.f32 0.2, %v1162_v26  ;;  %v1170_v30 = vmul.f32 0.2, %v1164_v27 }
 0x4ec   : > { %vm1166_vm8 = vcmp.ge.f32.partialorder %v1163_v28, 0.0  ;;  %v1169_v31 = vmul.f32 0.2, %v1163_v28 }
 0x4ed   : > { %v1171_v33 = vsel %vm1165_vm6, %v1162_v26, %v1168_v29  ;;  %v1173_v35 = vsel %vm1167_vm7, %v1164_v27, %v1170_v30 }
 0x4ee   : > { %v1172_v36 = vsel %vm1166_vm8, %v1163_v28, %v1169_v31  ;;  %v1340_v37 = vpack.c.bf16 %v1173_v35, %v1173_v35 }
 0x4ef   : > { %v1339_v38 = vpack.c.bf16 %v1172_v36, %v1171_v33 }
 0x4f0   : > { %1188 = vst [vmem:[%s280_s8 + $0x8] sm:$0xf] %v1340_v37 }
 0x4f1   : > { %1187 = vst [vmem:[%s280_s8] sm:$0xff] %v1339_v38 }
 0x4f2 PF: > { %s15_s20 = sadd.s32 1, %s1725_s20   ;;  %s2120_s18 = smov %s1721_s19 }
 0x4f3   : > { %p12_p5 = scmp.ge.s32.totalorder %s15_s20, 4   ;;  %s2121_s19 = smov %s2123_s21 }
 0x4f5   :  { %14 = sbr.rel (!%p12_p5) target bundleno = 2 (0x2), region = 76 }

// kernel: discriminator_forward.5
= control target key start
LH: loop header
LB: loop body
LE: loop exit
PB: predicated region body
PF: predicated region fallthrough
CT: control target
= control target key end

     0   :  { %s920_s22 = smov 127   ;;  %s921_s8 = smov 119   ;;  %v922_v9 = vmov 0   ;;  %vm95_vm0 = vcmask 1039360   ;;  %vm154_vm1 = vcmask 973824   ;;  %vm213_vm2 = vcmask 965632   ;;  %s1167_s0 = inlined_call_operand.vmem [shape: bf16[1,32,384], index: 0, kind: input, shape index: {}]   ;;  %s1168_s1 = inlined_call_operand.vmem [shape: bf16[16,128], index: 1, kind: input, shape index: {}]   ;;  %s1169_s3 = inlined_call_operand.vmem [shape: f32[256,8], index: 3, kind: input, shape index: {}]   ;;  %s1170_s4 = inlined_call_operand.vmem [shape: f32[8,256], index: 4, kind: input, shape index: {}]   ;;  %s1171_s2 = inlined_call_operand.vmem [shape: f32[16,2], index: 2, kind: input, shape index: {}]   ;;  %s1172_s5 = inlined_call_operand.vmem [shape: bf16[1,16,256], index: 5, kind: output, shape index: {}]  }
   0x1   :  { %v903_v0 = vld [vmem:[%s1167_s0 + $0x4] ss:$12 sps:$4 sm:$0xff]   ;;  %v905_v1 = vld [vmem:[%s1167_s0] ss:$12 sps:$4 sm:$0xff]   ;;  %v906_v2 = vld [vmem:[%s1167_s0 + $0x8] ss:$12 sps:$4 sm:$0xff]   ;;  %282 = vmatprep.mubr.bf16.mxu0 %v922_v9  ;;  %899 = vset.pattern.permute.xlu0 %v922_v9 }
   0x2   :  { %85 = vrot.lane.b32.xlu0 %v903_v0, %s920_s22  ;;  %250 = vmatprep.subr.bf16.mxu0 %v903_v0  ;;  %v907_v3 = vld [vmem:[%s1167_s0 + $0x1c] ss:$12 sps:$4 sm:$0xff]   ;;  %v910_v4 = vld [vmem:[%s1167_s0 + $0x18] ss:$12 sps:$4 sm:$0xff]   ;;  %v909_v5 = vld [vmem:[%s1167_s0 + $0x20] ss:$12 sps:$4 sm:$0xff]  }
   0x3   :  { %83 = vrot.lane.b32.xlu1 %v905_v1, %s920_s22  ;;  %251 = vmatpush1.bf16.msra.mxu0 %v905_v1  ;;  %v911_v6 = vld [vmem:[%s1167_s0 + $0x8] ss:$12 sps:$4 sm:$0xff]   ;;  %v912_v7 = vld [vmem:[%s1167_s0 + $0x20] ss:$12 sps:$4 sm:$0xff]   ;;  %s923_s13 = smov 118   ;;  %v312_v16 = vld [vmem:[%s1169_s3 + $0x98] sm:$0xff] }
   0x4   :  { %252 = vmatprep.subr.bf16.mxu0 %v907_v3  ;;  %v913_v8 = vld [vmem:[%s1167_s0 + $0x8] ss:$12 sps:$4 sm:$0xff]   ;;  %900 = vset.pattern.permute.xlu1 %v922_v9  ;;  %v309_v10 = vld [vmem:[%s1169_s3 + $0x80] sm:$0xff]  ;;  %v296_v20 = vld [vmem:[%s1169_s3 + $0x18] sm:$0xff]  ;;  %vm404_vm3 = vcmask 64512  }
   0x5   :  { %v310_v11 = vld [vmem:[%s1169_s3 + $0x88] sm:$0xff]  ;;  %v293_v12 = vld [vmem:[%s1169_s3] sm:$0xff]  ;;  %v311_v15 = vld [vmem:[%s1169_s3 + $0x90] sm:$0xff] }
   0x6   :  { %87 = vrot.lane.b32.xlu0 %v906_v2, %s920_s22  ;;  %v992_v13 = vpack.c.bf16 %v310_v11, %v309_v10  ;;  %v294_v14 = vld [vmem:[%s1169_s3 + $0x8] sm:$0xff]  ;;  %v1005_v18 = vpack.c.bf16 %v312_v16, %v311_v15  ;;  %v295_v19 = vld [vmem:[%s1169_s3 + $0x10] sm:$0xff]  ;;  %v313_v21 = vld [vmem:[%s1169_s3 + $0xa0] sm:$0xff] }
   0x7   :  { %91 = vrot.lane.b32.xlu1 %v907_v3, %s920_s22  ;;  %253 = vmatpush1.bf16.msra.mxu0 %v910_v4  ;;  %v1003_v17 = vpack.c.bf16 %v294_v14, %v293_v12  ;;  %v914_v22 = vld [vmem:[%s1167_s0 + $0x20] ss:$12 sps:$4 sm:$0xff]   ;;  %v1024_v24 = vpack.c.bf16 %v296_v20, %v295_v19  ;;  %v315_v28 = vld [vmem:[%s1169_s3 + $0xb0] sm:$0xff]  ;;  %v316_v29 = vld [vmem:[%s1169_s3 + $0xb8] sm:$0xff] }
   0x8   :  { %830 = vmatprep.subr.bf16.mxu1 %v992_v13  ;;  %v314_v23 = vld [vmem:[%s1169_s3 + $0xa8] sm:$0xff]  ;;  %v297_v26 = vld [vmem:[%s1169_s3 + $0x20] sm:$0xff]  ;;  %v1045_v31 = vpack.c.bf16 %v316_v29, %v315_v28  ;;  %v299_v32 = vld [vmem:[%s1169_s3 + $0x30] sm:$0xff] }
   0x9   :  { %832 = vmatpush3.bf16.msra.mxu1 %v1003_v17  ;;  %v1027_v25 = vpack.c.bf16 %v314_v23, %v313_v21  ;;  %v298_v27 = vld [vmem:[%s1169_s3 + $0x28] sm:$0xff]  ;;  %v300_v33 = vld [vmem:[%s1169_s3 + $0x38] sm:$0xff]  ;;  %v317_v34 = vld [vmem:[%s1169_s3 + $0xc0] sm:$0xff] }
   0xa   :  { %93 = vrot.lane.b32.xlu0 %v909_v5, %s920_s22  ;;  %834 = vmatprep.subr.bf16.mxu1 %v1005_v18  ;;  %v1042_v30 = vpack.c.bf16 %v298_v27, %v297_v26  ;;  %v318_v35 = vld [vmem:[%s1169_s3 + $0xc8] sm:$0xff]  ;;  %v1060_v36 = vpack.c.bf16 %v300_v33, %v299_v32  ;;  %v301_v38 = vld [vmem:[%s1169_s3 + $0x40] sm:$0xff]  ;;  %v319_v40 = vld [vmem:[%s1169_s3 + $0xd0] sm:$0xff] }
   0xb   :  { %89 = vrot.lane.b32.xlu1 %v910_v4, %s920_s22  ;;  %v1063_v37 = vpack.c.bf16 %v318_v35, %v317_v34  ;;  %v302_v39 = vld [vmem:[%s1169_s3 + $0x48] sm:$0xff]  ;;  %v320_v41 = vld [vmem:[%s1169_s3 + $0xd8] sm:$0xff]  ;;  %v303_v44 = vld [vmem:[%s1169_s3 + $0x50] sm:$0xff] }
   0xc   :  { %v1078_v42 = vpack.c.bf16 %v302_v39, %v301_v38  ;;  %v1081_v43 = vpack.c.bf16 %v320_v41, %v319_v40  ;;  %v304_v45 = vld [vmem:[%s1169_s3 + $0x58] sm:$0xff]  ;;  %v321_v46 = vld [vmem:[%s1169_s3 + $0xe0] sm:$0xff]  ;;  %v322_v47 = vld [vmem:[%s1169_s3 + $0xe8] sm:$0xff] }
   0xd   :  { %836 = vmatpush3.bf16.msra.mxu1 %v1024_v24  ;;  %v1096_v48 = vpack.c.bf16 %v304_v45, %v303_v44  ;;  %v1099_v49 = vpack.c.bf16 %v322_v47, %v321_v46  ;;  %v305_v50 = vld [vmem:[%s1169_s3 + $0x60] sm:$0xff]  ;;  %v306_v51 = vld [vmem:[%s1169_s3 + $0x68] sm:$0xff]  ;;  %v323_v52 = vld [vmem:[%s1169_s3 + $0xf0] sm:$0xff] }
   0xe   :  { %144 = vrot.lane.b32.xlu0 %v903_v0, %s921_s8  ;;  %838 = vmatprep.subr.bf16.mxu1 %v1027_v25  ;;  %v324_v53 = vld [vmem:[%s1169_s3 + $0xf8] sm:$0xff]  ;;  %v1114_v54 = vpack.c.bf16 %v306_v51, %v305_v50  ;;  %v915_v27 = vld [vmem:[%s1168_s1] sm:$0xff]   ;;  %v307_v28 = vld [vmem:[%s1169_s3 + $0x70] sm:$0xff] }
   0xf   :  { %146 = vrot.lane.b32.xlu1 %v911_v6, %s921_s8  ;;  %v1117_v55 = vpack.c.bf16 %v324_v53, %v323_v52  ;;  %v308_v29 = vld [vmem:[%s1169_s3 + $0x78] sm:$0xff]  ;;  %v403_v33 = vld [vmem:[%s1170_s4 + $0x8] sm:$0xff]  ;;  %v402_v34 = vld [vmem:[%s1170_s4] sm:$0xff] }
  0x10   :  { %v859_v32 = vpack.c.bf16 %v308_v29, %v307_v28  ;;  %v575_v41 = vld [vmem:[%s1171_s2] sm:$0xff] }
  0x11   :  { %840 = vmatpush3.bf16.msra.mxu1 %v1042_v30 }
  0x12   :  { %142 = vrot.lane.b32.xlu0 %v905_v1, %s921_s8  ;;  %842 = vmatprep.subr.bf16.mxu1 %v1045_v31 }
  0x13   :  { %150 = vrot.lane.b32.xlu1 %v907_v3, %s921_s8 }
  0x15   :  { %844 = vmatpush3.bf16.msra.mxu1 %v1060_v36 }
  0x16   :  { %152 = vrot.lane.b32.xlu0 %v912_v7, %s921_s8  ;;  %846 = vmatprep.subr.bf16.mxu1 %v1063_v37 }
  0x17   :  { %148 = vrot.lane.b32.xlu1 %v910_v4, %s921_s8 }
  0x19   :  { %848 = vmatpush3.bf16.msra.mxu1 %v1078_v42 }
  0x1a   :  { %203 = vrot.lane.b32.xlu0 %v903_v0, %s923_s13  ;;  %850 = vmatprep.subr.bf16.mxu1 %v1081_v43 }
  0x1b   :  { %205 = vrot.lane.b32.xlu1 %v913_v8, %s923_s13 }
  0x1d   :  { %852 = vmatpush3.bf16.msra.mxu1 %v1096_v48 }
  0x1e   :  { %201 = vrot.lane.b32.xlu0 %v905_v1, %s923_s13  ;;  %854 = vmatprep.subr.bf16.mxu1 %v1099_v49 }
  0x1f   :  { %209 = vrot.lane.b32.xlu1 %v907_v3, %s923_s13 }
  0x21   :  { %856 = vmatpush3.bf16.msra.mxu1 %v1114_v54 }
  0x22   :  { %211 = vrot.lane.b32.xlu0 %v914_v22, %s923_s13  ;;  %858 = vmatprep.subr.bf16.mxu1 %v1117_v55 }
  0x23   :  { %207 = vrot.lane.b32.xlu1 %v910_v4, %s923_s13 }
  0x25   :  { %860 = vmatpush3.bf16.msra.mxu1 %v859_v32 }
  0x26   :  { %862 = vmatprep.subr.bf16.mxu1 %v992_v13  ;;  %v924_v13 = vmov 0.0   ;;  %583 = vperm.xlu0 %899, %v575_v41  }
  0x74   :  { %v86_v56 = vpop.permute.xlu0 %85 }
  0x75   :  { %v84_v57 = vpop.permute.xlu1 %83 }
  0x76   :  { %v96_v61 = vsel %vm95_vm0, %v84_v57, %v86_v56 }
  0x78   :  { %v88_v58 = vpop.permute.xlu0 %87 }
  0x79   :  { %v92_v59 = vpop.permute.xlu1 %91  ;;  %v97_v60 = vsel %vm95_vm0, %v86_v56, %v88_v58 }
  0x7a   :  { %254 = vmatprep.subr.bf16.mxu0 %v97_v60 }
  0x7b   :  { %255 = vmatpush1.bf16.msra.mxu0 %v96_v61 }
  0x7c   :  { %v94_v62 = vpop.permute.xlu0 %93 }
  0x7d   :  { %v90_v63 = vpop.permute.xlu1 %89  ;;  %v99_v0 = vsel %vm95_vm0, %v92_v59, %v94_v62 }
  0x7e   :  { %256 = vmatprep.subr.bf16.mxu0 %v99_v0  ;;  %v98_v1 = vsel %vm95_vm0, %v90_v63, %v92_v59 }
  0x7f   :  { %257 = vmatpush1.bf16.msra.mxu0 %v98_v1 }
  0x80   :  { %v145_v2 = vpop.permute.xlu0 %144 }
  0x81   :  { %v147_v3 = vpop.permute.xlu1 %146 }
  0x82   :  { %v156_v4 = vsel %vm154_vm1, %v145_v2, %v147_v3 }
  0x83   :  { %258 = vmatprep.subr.bf16.mxu0 %v156_v4 }
  0x84   :  { %v143_v5 = vpop.permute.xlu0 %142 }
  0x85   :  { %v151_v6 = vpop.permute.xlu1 %150  ;;  %v155_v7 = vsel %vm154_vm1, %v143_v5, %v145_v2 }
  0x86   :  { %259 = vmatpush1.bf16.msra.mxu0 %v155_v7 }
  0x88   :  { %v153_v8 = vpop.permute.xlu0 %152 }
  0x89   :  { %v149_v9 = vpop.permute.xlu1 %148  ;;  %v158_v10 = vsel %vm154_vm1, %v151_v6, %v153_v8 }
  0x8a   :  { %260 = vmatprep.subr.bf16.mxu0 %v158_v10  ;;  %v157_v11 = vsel %vm154_vm1, %v149_v9, %v151_v6 }
  0x8b   :  { %261 = vmatpush1.bf16.msra.mxu0 %v157_v11 }
  0x8c   :  { %v204_v12 = vpop.permute.xlu0 %203 }
  0x8d   :  { %v206_v14 = vpop.permute.xlu1 %205 }
  0x8e   :  { %v215_v15 = vsel %vm213_vm2, %v204_v12, %v206_v14 }
  0x8f   :  { %262 = vmatprep.subr.bf16.mxu0 %v215_v15 }
  0x90   :  { %v202_v16 = vpop.permute.xlu0 %201 }
  0x91   :  { %v210_v19 = vpop.permute.xlu1 %209  ;;  %v214_v20 = vsel %vm213_vm2, %v202_v16, %v204_v12 }
  0x92   :  { %263 = vmatpush1.bf16.msra.mxu0 %v214_v20 }
  0x94   :  { %v212_v21 = vpop.permute.xlu0 %211 }
  0x95   :  { %v208_v22 = vpop.permute.xlu1 %207  ;;  %v217_v23 = vsel %vm213_vm2, %v210_v19, %v212_v21 }
  0x96   :  { %264 = vmatprep.subr.bf16.mxu0 %v217_v23  ;;  %v216_v26 = vsel %vm213_vm2, %v208_v22, %v210_v19 }
  0x97   :  { %265 = vmatpush1.bf16.msra.mxu0 %v216_v26 }
  0x98   :  { %411 = vmatprep.subr.mxu0 %v403_v33 }
  0x9a   :  { %283 = vmatmul.mubr.bf16.vlgmr.msra.gmra.mrb[0].mxu0 %v915_v27 }
  0x9b   :  { %412 = vmatpush1.msra.mxu0 %v402_v34  ;;  %475 = vmatprep.mubr.f32.mxu0 %v924_v13 }
  0x9c   :  { %599 = vmatprep.subr.mxu0 %v403_v33 }
  0xa5   :  { %v584_v4 = vpop.permute.xlu0 %583 }
 0x16d   :  { %v284_v35 = vpop.f32.mrb[0].mxu0 }
 0x16e   :  { %v286_v38 = vpop.f32.mrb[1].mxu0 }
 0x16f   :  { %v288_v39 = vpop.f32.mrb[2].mxu0  ;;  %389 = vmatprep.mubr.f32.mxu1 %v286_v38 }
 0x170   :  { %v290_v40 = vpop.f32.mrb[3].mxu0  ;;  %390 = vmatmul.mubr.f32.vlgmr.msra.gmra.mrb[0].mxu1 %v284_v35 }
 0x171   :  { %394 = vmatprep.mubr.f32.mxu1 %v290_v40  ;;  %864 = vmatpush3.bf16.msra.mxu1 %v1003_v17 }
 0x172   :  { %866 = vmatprep.subr.bf16.mxu1 %v1005_v18 }
 0x174   :  { %395 = vmatmul.mubr.f32.gmra.mrb[2].mxu1 %v288_v39 }
 0x175   :  { %868 = vmatpush3.bf16.msra.mxu1 %v1024_v24 }
 0x176   :  { %870 = vmatprep.subr.bf16.mxu1 %v1027_v25 }
 0x179   :  { %872 = vmatpush3.bf16.msra.mxu1 %v1042_v30 }
 0x17a   :  { %874 = vmatprep.subr.bf16.mxu1 %v1045_v31 }
 0x17d   :  { %876 = vmatpush3.bf16.msra.mxu1 %v1060_v36 }
 0x17e   :  { %878 = vmatprep.subr.bf16.mxu1 %v1063_v37 }
 0x181   :  { %880 = vmatpush3.bf16.msra.mxu1 %v1078_v42  ;;  %v576_v42 = vld [vmem:[%s1171_s2 + $0x8] sm:$0xff] }
 0x182   :  { %882 = vmatprep.subr.bf16.mxu1 %v1081_v43  ;;  %588 = vperm.xlu1 %900, %v576_v42  }
 0x185   :  { %884 = vmatpush3.bf16.msra.mxu1 %v1096_v48 }
 0x186   :  { %886 = vmatprep.subr.bf16.mxu1 %v1099_v49 }
 0x189   :  { %888 = vmatpush3.bf16.msra.mxu1 %v1114_v54 }
 0x18a   :  { %890 = vmatprep.subr.bf16.mxu1 %v1117_v55  ;;  %v925_v55 = vmov 1  }
 0x18b   :  { %901 = vset.pattern.permute.xlu1 %v925_v55  ;;  %902 = vset.pattern.permute.xlu0 %v925_v55 }
 0x18c   :  { %681 = vperm.xlu1 %901, %v575_v41   ;;  %685 = vperm.xlu0 %902, %v576_v42  }
 0x18d   :  { %892 = vmatpush3.bf16.msra.mxu1 %v859_v32 }
 0x201   :  { %v589_v7 = vpop.permute.xlu1 %588 }
 0x20b   :  { %v682_v11 = vpop.permute.xlu1 %681  ;;  %v686_v21 = vpop.permute.xlu0 %685 }
 0x243   :  { %v785_v17 = vpop.f32.mrb[0].mxu1 }
 0x244   :  { %v786_v18 = vpop.f32.mrb[1].mxu1 }
 0x245   :  { %v787_v24 = vadd.f32 %v786_v18, %v785_v17 }
 0x247   :  { %v400_v25 = vmul.f32 0.015625, %v787_v24  ;;  %v788_v30 = vpop.f32.mrb[2].mxu1 }
 0x248   :  { %v789_v31 = vpop.f32.mrb[3].mxu1 }
 0x249   :  { %v790_v36 = vadd.f32 %v789_v31, %v788_v30  ;;  %745 = vmatmul.mubr.msk.f32.vlgmr.msra.gmra.mrb[4].mxu0 %vm404_vm3, %v400_v25 }
 0x24a   :  { %481 = vmatprep.mubr.f32.mxu0 %v924_v13  ;;  %600 = vmatpush1.msra.mxu0 %v402_v34 }
 0x24b   :  { %v401_v37 = vmul.f32 0.015625, %v790_v36 }
 0x24d   :  { %746 = vmatmul.mubr.msk.f32.gmra.mrb[6].mxu0 %vm404_vm3, %v401_v37 }
 0x24e   :  { %663 = vmatprep.mubr.f32.mxu0 %v924_v13 }
 0x31c   :  { %v477_v43 = vpop.f32.mrb[4].mxu0 }
 0x31d   :  { %v488_v44 = vsub.f32 %v284_v35, %v477_v43  ;;  %v479_v45 = vpop.f32.mrb[5].mxu0 }
 0x31e   :  { %v489_v46 = vsub.f32 %v286_v38, %v479_v45 }
 0x31f   :  { %v492_v49 = vmul.f32 %v488_v44, %v488_v44 }
 0x320   :  { %v493_v47 = vmul.f32 %v489_v46, %v489_v46  ;;  %v483_v48 = vpop.f32.mrb[6].mxu0 }
 0x321   :  { %v490_v50 = vsub.f32 %v288_v39, %v483_v48  ;;  %v485_v51 = vpop.f32.mrb[7].mxu0 }
 0x322   :  { %v491_v52 = vsub.f32 %v290_v40, %v485_v51  ;;  %560 = vmatprep.mubr.f32.mxu1 %v493_v47 }
 0x323   :  { %561 = vmatmul.mubr.f32.vlgmr.msra.gmra.mrb[4].mxu1 %v492_v49  ;;  %v494_v54 = vmul.f32 %v490_v50, %v490_v50 }
 0x324   :  { %v495_v53 = vmul.f32 %v491_v52, %v491_v52 }
 0x326   :  { %565 = vmatprep.mubr.f32.mxu1 %v495_v53 }
 0x327   :  { %566 = vmatmul.mubr.f32.gmra.mrb[6].mxu1 %v494_v54 }
 0x3f6   :  { %v823_v56 = vpop.f32.mrb[4].mxu1 }
 0x3f7   :  { %v824_v57 = vpop.f32.mrb[5].mxu1 }
 0x3f8   :  { %v825_v58 = vadd.f32 %v824_v57, %v823_v56 }
 0x3fa   :  { %v571_v59 = vmul.f32 0.015625, %v825_v58  ;;  %v826_v60 = vpop.f32.mrb[6].mxu1 }
 0x3fb   :  { %v827_v61 = vpop.f32.mrb[7].mxu1 }
 0x3fc   :  { %v573_v62 = vmax.f32 %v571_v59, 0.0  ;;  %v828_v63 = vadd.f32 %v827_v61, %v826_v60 }
 0x3fe   :  { %v577_v0 = vadd.f32 1e-05, %v573_v62  ;;  %v572_v1 = vmul.f32 0.015625, %v828_v63 }
 0x400   :  { %916 = vrsqrt.f32 %v577_v0  ;;  %v574_v2 = vmax.f32 %v572_v1, 0.0 }
 0x402   :  { %v578_v3 = vadd.f32 1e-05, %v574_v2 }
 0x404   :  { %918 = vrsqrt.f32 %v578_v3 }
 0x40a   :  { %v917_v5 = vpop.eup %916 }
 0x40b   :  { %v591_v6 = vmul.f32 %v917_v5, %v584_v4 }
 0x40d   :  { %747 = vmatmul.mubr.msk.f32.vlgmr.msra.gmra.mrb[8].mxu0 %vm404_vm3, %v591_v6 }
 0x40e   :  { %v919_v8 = vpop.eup %918  ;;  %669 = vmatprep.mubr.f32.mxu0 %v924_v13 }
 0x40f   :  { %v592_v9 = vmul.f32 %v919_v8, %v589_v7 }
 0x411   :  { %748 = vmatmul.mubr.msk.f32.gmra.mrb[10].mxu0 %vm404_vm3, %v592_v9 }
 0x4e0   :  { %v665_v10 = vpop.f32.mrb[8].mxu0 }
 0x4e1   :  { %v676_v12 = vmul.f32 %v665_v10, %v488_v44  ;;  %v667_v14 = vpop.f32.mrb[9].mxu0 }
 0x4e2   :  { %v677_v15 = vmul.f32 %v667_v14, %v489_v46 }
 0x4e3   :  { %v688_v16 = vadd.f32 %v682_v11, %v676_v12 }
 0x4e4   :  { %v689_v19 = vadd.f32 %v682_v11, %v677_v15  ;;  %v671_v20 = vpop.f32.mrb[10].mxu0 }
 0x4e5   :  { %vm692_vm4 = vcmp.ge.f32.partialorder %v688_v16, 0.0  ;;  %v696_v22 = vmul.f32 0.2, %v688_v16  ;;  %v678_v23 = vmul.f32 %v671_v20, %v490_v50  ;;  %v673_v26 = vpop.f32.mrb[11].mxu0 }
 0x4e6   :  { %vm693_vm5 = vcmp.ge.f32.partialorder %v689_v19, 0.0  ;;  %v697_v27 = vmul.f32 0.2, %v689_v19  ;;  %v679_v28 = vmul.f32 %v673_v26, %v491_v52 }
 0x4e7   :  { %v700_v29 = vsel %vm692_vm4, %v688_v16, %v696_v22  ;;  %v690_v32 = vadd.f32 %v686_v21, %v678_v23 }
 0x4e8   :  { %v701_v33 = vsel %vm693_vm5, %v689_v19, %v697_v27  ;;  %v691_v34 = vadd.f32 %v686_v21, %v679_v28 }
 0x4e9   :  { %v751_v35 = vpack.c.bf16 %v701_v33, %v700_v29  ;;  %vm694_vm6 = vcmp.ge.f32.partialorder %v690_v32, 0.0  ;;  %v698_v38 = vmul.f32 0.2, %v690_v32 }
 0x4ea   :  { %vm695_vm7 = vcmp.ge.f32.partialorder %v691_v34, 0.0  ;;  %v699_v39 = vmul.f32 0.2, %v691_v34 }
 0x4eb   :  { %716 = vst [vmem:[%s1172_s5] sm:$0xff] %v751_v35  ;;  %v702_v40 = vsel %vm694_vm6, %v690_v32, %v698_v38 }
 0x4ec   :  { %v703_v13 = vsel %vm695_vm7, %v691_v34, %v699_v39 }
 0x4ed   :  { %v752_v17 = vpack.c.bf16 %v703_v13, %v702_v40 }
 0x4ef   :  { %717 = vst [vmem:[%s1172_s5 + $0x8] sm:$0xff] %v752_v17 }

// kernel: discriminator_forward.6
= control target key start
LH: loop header
LB: loop body
LE: loop exit
PB: predicated region body
PF: predicated region fallthrough
CT: control target
= control target key end

     0   :  { %s1183_s22 = smov 123   ;;  %s1184_s10 = smov 122   ;;  %vm182_vm0 = vcmask 1006592   ;;  %vm251_vm1 = vcmask 998400   ;;  %vm113_vm2 = vcmask 1039360   ;;  %vm459_vm3 = vcmask 64512   ;;  %s1407_s0 = inlined_call_operand.vmem [shape: bf16[1,64,256], index: 0, kind: input, shape index: {}]   ;;  %s1408_s1 = inlined_call_operand.vmem [shape: bf16[32,256], index: 1, kind: input, shape index: {}]   ;;  %s1409_s3 = inlined_call_operand.vmem [shape: f32[128,8], index: 3, kind: input, shape index: {}]   ;;  %s1410_s4 = inlined_call_operand.vmem [shape: f32[8,128], index: 4, kind: input, shape index: {}]   ;;  %s1411_s2 = inlined_call_operand.vmem [shape: f32[32,2], index: 2, kind: input, shape index: {}]   ;;  %s1412_s5 = inlined_call_operand.vmem [shape: bf16[1,32,128], index: 5, kind: output, shape index: {}]  }
   0x1   :  { %v1153_v0 = vld [vmem:[%s1407_s0 + $0x10] ss:$8 sps:$4 sm:$0xff]   ;;  %v1155_v1 = vld [vmem:[%s1407_s0 + $0x14] ss:$8 sps:$4 sm:$0xff]   ;;  %v1156_v2 = vld [vmem:[%s1407_s0] ss:$8 sps:$4 sm:$0xff]  }
   0x2   :  { %170 = vrot.lane.b32.xlu1 %v1153_v0, %s1183_s22  ;;  %v1158_v3 = vld [vmem:[%s1407_s0 + $0x4] ss:$8 sps:$4 sm:$0xff]   ;;  %166 = vrot.lane.b32.xlu0 %v1156_v2, %s1183_s22  ;;  %v1161_v5 = vld [vmem:[%s1407_s0 + $0x20] ss:$8 sps:$4 sm:$0xff]   ;;  %s1185_s11 = smov 127  }
   0x3   :  { %v1159_v4 = vld [vmem:[%s1407_s0 + $0x24] ss:$8 sps:$4 sm:$0xff]   ;;  %v1162_v6 = vld [vmem:[%s1407_s0 + $0x34] ss:$8 sps:$4 sm:$0xff]   ;;  %v1164_v7 = vld [vmem:[%s1407_s0 + $0x30] ss:$8 sps:$4 sm:$0xff]  }
   0x4   :  { %v1171_v8 = vld [vmem:[%s1408_s1 + $0x4] ss:$8 sps:$4 sm:$0xff]   ;;  %v355_v11 = vld [vmem:[%s1409_s3 + $0x10] sm:$0xff]  ;;  %v356_v13 = vld [vmem:[%s1409_s3 + $0x18] sm:$0xff] }
   0x5   :  { %336 = vmatprep.mubr.bf16.mxu0 %v1171_v8  ;;  %v353_v9 = vld [vmem:[%s1409_s3] sm:$0xff]  ;;  %v354_v10 = vld [vmem:[%s1409_s3 + $0x8] sm:$0xff]  ;;  %v1259_v14 = vpack.c.bf16 %v356_v13, %v355_v11  ;;  %v359_v18 = vld [vmem:[%s1409_s3 + $0x30] sm:$0xff] }
   0x6   :  { %172 = vrot.lane.b32.xlu1 %v1155_v1, %s1183_s22  ;;  %168 = vrot.lane.b32.xlu0 %v1158_v3, %s1183_s22  ;;  %v1254_v12 = vpack.c.bf16 %v354_v10, %v353_v9  ;;  %v357_v15 = vld [vmem:[%s1409_s3 + $0x20] sm:$0xff]  ;;  %v358_v16 = vld [vmem:[%s1409_s3 + $0x28] sm:$0xff] }
   0x7   :  { %v1270_v17 = vpack.c.bf16 %v358_v16, %v357_v15  ;;  %v360_v19 = vld [vmem:[%s1409_s3 + $0x38] sm:$0xff]  ;;  %v361_v21 = vld [vmem:[%s1409_s3 + $0x40] sm:$0xff]  ;;  %v362_v22 = vld [vmem:[%s1409_s3 + $0x48] sm:$0xff] }
   0x8   :  { %1081 = vmatprep.subr.bf16.mxu1 %v1254_v12  ;;  %v1280_v20 = vpack.c.bf16 %v360_v19, %v359_v18  ;;  %v1290_v23 = vpack.c.bf16 %v362_v22, %v361_v21  ;;  %v363_v24 = vld [vmem:[%s1409_s3 + $0x50] sm:$0xff]  ;;  %v364_v25 = vld [vmem:[%s1409_s3 + $0x58] sm:$0xff]  ;;  %v365_v27 = vld [vmem:[%s1409_s3 + $0x60] sm:$0xff] }
   0x9   :  { %1083 = vmatpush3.bf16.msra.mxu1 %v1254_v12  ;;  %v1300_v26 = vpack.c.bf16 %v364_v25, %v363_v24  ;;  %v366_v28 = vld [vmem:[%s1409_s3 + $0x68] sm:$0xff]  ;;  %v1166_v38 = vld [vmem:[%s1407_s0 + $0x10] ss:$8 sps:$4 sm:$0xff]   ;;  %v458_v24 = vld [vmem:[%s1410_s4] sm:$0xff] }
   0xa   :  { %176 = vrot.lane.b32.xlu1 %v1159_v4, %s1183_s22  ;;  %174 = vrot.lane.b32.xlu0 %v1161_v5, %s1183_s22  ;;  %v1310_v29 = vpack.c.bf16 %v366_v28, %v365_v27  ;;  %v1165_v33 = vld [vmem:[%s1407_s0] ss:$8 sps:$4 sm:$0xff]   ;;  %v1168_v46 = vld [vmem:[%s1407_s0 + $0x30] ss:$8 sps:$4 sm:$0xff]  }
   0xb   :  { %1085 = vmatprep.subr.bf16.mxu1 %v1259_v14  ;;  %v1167_v42 = vld [vmem:[%s1407_s0 + $0x20] ss:$8 sps:$4 sm:$0xff]   ;;  %v1174_v8 = vld [vmem:[%s1408_s1 + $0x10] ss:$8 sps:$4 sm:$0xff]  }
   0xc   :  { %v367_v9 = vld [vmem:[%s1409_s3 + $0x70] sm:$0xff]  ;;  %v368_v10 = vld [vmem:[%s1409_s3 + $0x78] sm:$0xff] }
   0xd   :  { %1087 = vmatpush3.bf16.msra.mxu1 %v1259_v14  ;;  %v1108_v11 = vpack.c.bf16 %v368_v10, %v367_v9 }
   0xe   :  { %180 = vrot.lane.b32.xlu1 %v1162_v6, %s1183_s22  ;;  %178 = vrot.lane.b32.xlu0 %v1164_v7, %s1183_s22 }
   0xf   :  { %1089 = vmatprep.subr.bf16.mxu1 %v1270_v17 }
  0x11   :  { %1091 = vmatpush3.bf16.msra.mxu1 %v1270_v17 }
  0x12   :  { %237 = vrot.lane.b32.xlu1 %v1158_v3, %s1184_s10  ;;  %235 = vrot.lane.b32.xlu0 %v1156_v2, %s1184_s10 }
  0x13   :  { %1093 = vmatprep.subr.bf16.mxu1 %v1280_v20 }
  0x15   :  { %1095 = vmatpush3.bf16.msra.mxu1 %v1280_v20 }
  0x16   :  { %99 = vrot.lane.b32.xlu1 %v1158_v3, %s1185_s11  ;;  %97 = vrot.lane.b32.xlu0 %v1156_v2, %s1185_s11 }
  0x17   :  { %1097 = vmatprep.subr.bf16.mxu1 %v1290_v23 }
  0x19   :  { %1099 = vmatpush3.bf16.msra.mxu1 %v1290_v23 }
  0x1a   :  { %241 = vrot.lane.b32.xlu1 %v1155_v1, %s1184_s10  ;;  %239 = vrot.lane.b32.xlu0 %v1153_v0, %s1184_s10 }
  0x1b   :  { %1101 = vmatprep.subr.bf16.mxu1 %v1300_v26 }
  0x1d   :  { %1103 = vmatpush3.bf16.msra.mxu1 %v1300_v26 }
  0x1e   :  { %103 = vrot.lane.b32.xlu1 %v1155_v1, %s1185_s11  ;;  %101 = vrot.lane.b32.xlu0 %v1153_v0, %s1185_s11 }
  0x1f   :  { %1105 = vmatprep.subr.bf16.mxu1 %v1310_v29 }
  0x21   :  { %1107 = vmatpush3.bf16.msra.mxu1 %v1310_v29 }
  0x22   :  { %245 = vrot.lane.b32.xlu1 %v1159_v4, %s1184_s10  ;;  %243 = vrot.lane.b32.xlu0 %v1161_v5, %s1184_s10 }
  0x23   :  { %1109 = vmatprep.subr.bf16.mxu1 %v1108_v11 }
  0x25   :  { %1111 = vmatpush3.bf16.msra.mxu1 %v1108_v11 }
  0x26   :  { %107 = vrot.lane.b32.xlu1 %v1159_v4, %s1185_s11  ;;  %105 = vrot.lane.b32.xlu0 %v1161_v5, %s1185_s11 }
  0x27   :  { %1026 = vmatprep.subr.mxu1 %v458_v24 }
  0x2a   :  { %249 = vrot.lane.b32.xlu1 %v1162_v6, %s1184_s10  ;;  %247 = vrot.lane.b32.xlu0 %v1164_v7, %s1184_s10 }
  0x2e   :  { %111 = vrot.lane.b32.xlu1 %v1162_v6, %s1185_s11  ;;  %109 = vrot.lane.b32.xlu0 %v1164_v7, %s1185_s11  ;;  %v1169_v6 = vld [vmem:[%s1408_s1] ss:$8 sps:$4 sm:$0xff]   ;;  %v1172_v7 = vld [vmem:[%s1408_s1 + $0x14] ss:$8 sps:$4 sm:$0xff]  }
  0x74   :  { %v171_v30 = vpop.permute.xlu1 %170  ;;  %v167_v31 = vpop.permute.xlu0 %166 }
  0x78   :  { %v173_v32 = vpop.permute.xlu1 %172  ;;  %v169_v34 = vpop.permute.xlu0 %168 }
  0x79   :  { %v183_v35 = vsel %vm182_vm0, %v167_v31, %v169_v34  ;;  %v184_v37 = vsel %vm182_vm0, %v171_v30, %v173_v32  ;;  %v659_v34 = vld [vmem:[%s1411_s2 + $0x8] sm:$0xff] }
  0x7a   :  { %910 = vmatprep.subr.bf16.mxu0 %v183_v35  ;;  %v658_v35 = vld [vmem:[%s1411_s2] sm:$0xff] }
  0x7b   :  { %911 = vmatpush3.bf16.msra.mxu0 %v1165_v33  ;;  %v1186_v33 = vmov 0  }
  0x7c   :  { %v177_v36 = vpop.permute.xlu1 %176  ;;  %v175_v39 = vpop.permute.xlu0 %174  ;;  %912 = vmatprep.subr.bf16.mxu0 %v184_v37  ;;  %1150 = vset.pattern.permute.xlu1 %v1186_v33  ;;  %v661_v37 = vld [vmem:[%s1411_s2 + $0x18] sm:$0xff] }
  0x7d   :  { %v185_v41 = vsel %vm182_vm0, %v175_v39, %v177_v36  ;;  %1149 = vset.pattern.permute.xlu0 %v1186_v33  ;;  %677 = vperm.xlu1 %1150, %v659_v34   ;;  %v660_v36 = vld [vmem:[%s1411_s2 + $0x10] sm:$0xff] }
  0x7e   :  { %672 = vperm.xlu0 %1149, %v658_v35  }
  0x7f   :  { %913 = vmatpush3.bf16.msra.mxu0 %v1166_v38 }
  0x80   :  { %v181_v40 = vpop.permute.xlu1 %180  ;;  %v179_v43 = vpop.permute.xlu0 %178  ;;  %914 = vmatprep.subr.bf16.mxu0 %v185_v41 }
  0x81   :  { %v186_v45 = vsel %vm182_vm0, %v179_v43, %v181_v40  ;;  %682 = vperm.xlu1 %1150, %v660_v36  }
  0x82   :  { %687 = vperm.xlu0 %1149, %v661_v37  }
  0x83   :  { %915 = vmatpush3.bf16.msra.mxu0 %v1167_v42 }
  0x84   :  { %v238_v44 = vpop.permute.xlu1 %237  ;;  %v236_v47 = vpop.permute.xlu0 %235  ;;  %916 = vmatprep.subr.bf16.mxu0 %v186_v45 }
  0x85   :  { %v252_v49 = vsel %vm251_vm1, %v236_v47, %v238_v44 }
  0x87   :  { %917 = vmatpush3.bf16.msra.mxu0 %v1168_v46 }
  0x88   :  { %v100_v48 = vpop.permute.xlu1 %99  ;;  %v98_v50 = vpop.permute.xlu0 %97  ;;  %918 = vmatprep.subr.bf16.mxu0 %v252_v49 }
  0x89   :  { %v114_v51 = vsel %vm113_vm2, %v98_v50, %v100_v48  ;;  %v1187_v50 = vmov 1  }
  0x8a   :  { %1151 = vset.pattern.permute.xlu1 %v1187_v50  ;;  %1152 = vset.pattern.permute.xlu0 %v1187_v50 }
  0x8b   :  { %919 = vmatpush3.bf16.msra.mxu0 %v114_v51  ;;  %796 = vperm.xlu1 %1151, %v658_v35  }
  0x8c   :  { %v242_v52 = vpop.permute.xlu1 %241  ;;  %v240_v53 = vpop.permute.xlu0 %239  ;;  %800 = vperm.xlu0 %1152, %v659_v34  }
  0x8d   :  { %v253_v54 = vsel %vm251_vm1, %v240_v53, %v242_v52 }
  0x8e   :  { %920 = vmatprep.subr.bf16.mxu0 %v253_v54 }
  0x8f   :  { %804 = vperm.xlu1 %1151, %v660_v36  }
  0x90   :  { %v104_v55 = vpop.permute.xlu1 %103  ;;  %v102_v56 = vpop.permute.xlu0 %101 }
  0x91   :  { %v115_v57 = vsel %vm113_vm2, %v102_v56, %v104_v55 }
  0x92   :  { %921 = vmatpush3.bf16.msra.mxu0 %v115_v57 }
  0x93   :  { %808 = vperm.xlu1 %1151, %v661_v37  }
  0x94   :  { %v246_v58 = vpop.permute.xlu1 %245  ;;  %v244_v59 = vpop.permute.xlu0 %243 }
  0x95   :  { %v254_v60 = vsel %vm251_vm1, %v244_v59, %v246_v58 }
  0x96   :  { %922 = vmatprep.subr.bf16.mxu0 %v254_v60 }
  0x98   :  { %v108_v61 = vpop.permute.xlu1 %107  ;;  %v106_v62 = vpop.permute.xlu0 %105 }
  0x99   :  { %v116_v63 = vsel %vm113_vm2, %v106_v62, %v108_v61 }
  0x9a   :  { %923 = vmatpush3.bf16.msra.mxu0 %v116_v63 }
  0x9c   :  { %v250_v0 = vpop.permute.xlu1 %249  ;;  %v248_v1 = vpop.permute.xlu0 %247 }
  0x9d   :  { %v255_v2 = vsel %vm251_vm1, %v248_v1, %v250_v0 }
  0x9e   :  { %924 = vmatprep.subr.bf16.mxu0 %v255_v2 }
  0xa0   :  { %v112_v3 = vpop.permute.xlu1 %111  ;;  %v110_v4 = vpop.permute.xlu0 %109 }
  0xa1   :  { %v117_v5 = vsel %vm113_vm2, %v110_v4, %v112_v3 }
  0xa2   :  { %925 = vmatpush3.bf16.msra.mxu0 %v117_v5 }
  0xa3   :  { %1113 = vmatprep.subr.bf16.mxu0 %v1254_v12 }
  0xa5   :  { %337 = vmatmul.mubr.bf16.vlgmr.msra.gmra.mrb[0].mxu0 %v1169_v6 }
  0xa6   :  { %344 = vmatprep.mubr.bf16.mxu0 %v1172_v7  ;;  %1115 = vmatpush3.bf16.msra.mxu0 %v1254_v12 }
  0xa7   :  { %1117 = vmatprep.subr.bf16.mxu0 %v1259_v14 }
  0xaa   :  { %1119 = vmatpush3.bf16.msra.mxu0 %v1259_v14 }
  0xab   :  { %1121 = vmatprep.subr.bf16.mxu0 %v1270_v17 }
  0xad   :  { %345 = vmatmul.mubr.bf16.gmra.mrb[4].mxu0 %v1174_v8 }
  0xae   :  { %1123 = vmatpush3.bf16.msra.mxu0 %v1270_v17 }
  0xaf   :  { %1125 = vmatprep.subr.bf16.mxu0 %v1280_v20 }
  0xb2   :  { %1127 = vmatpush3.bf16.msra.mxu0 %v1280_v20 }
  0xb3   :  { %1129 = vmatprep.subr.bf16.mxu0 %v1290_v23 }
  0xb6   :  { %1131 = vmatpush3.bf16.msra.mxu0 %v1290_v23 }
  0xb7   :  { %1133 = vmatprep.subr.bf16.mxu0 %v1300_v26 }
  0xba   :  { %1135 = vmatpush3.bf16.msra.mxu0 %v1300_v26 }
  0xbb   :  { %1137 = vmatprep.subr.bf16.mxu0 %v1310_v29 }
  0xbe   :  { %1139 = vmatpush3.bf16.msra.mxu0 %v1310_v29 }
  0xbf   :  { %1141 = vmatprep.subr.bf16.mxu0 %v1108_v11 }
  0xc2   :  { %1143 = vmatpush3.bf16.msra.mxu0 %v1108_v11 }
  0xfc   :  { %v678_v5 = vpop.permute.xlu1 %677 }
  0xfd   :  { %v673_v3 = vpop.permute.xlu0 %672 }
 0x100   :  { %v683_v11 = vpop.permute.xlu1 %682 }
 0x178   :  { %v926_v12 = vpop.f32.mrb[0].mxu0 }
 0x179   :  { %v927_v13 = vpop.f32.mrb[1].mxu0 }
 0x17a   :  { %v928_v14 = vadd.f32 %v927_v13, %v926_v12  ;;  %v929_v15 = vpop.f32.mrb[2].mxu0  ;;  %v688_v13 = vpop.permute.xlu0 %687 }
 0x17b   :  { %v930_v16 = vpop.f32.mrb[3].mxu0 }
 0x17c   :  { %v931_v17 = vadd.f32 %v930_v16, %v929_v15  ;;  %1020 = vmatprep.mubr.f32.mxu1 %v928_v14  ;;  %v797_v15 = vpop.permute.xlu1 %796 }
 0x17e   :  { %1021 = vmatmul.mubr.f32.vlgmr.msra.gmra.mrb[0].mxu1 %v931_v17 }
 0x17f   :  { %1027 = vmatpush3.msra.mxu1 %v458_v24 }
 0x180   :  { %v932_v18 = vpop.f32.mrb[4].mxu0  ;;  %1072 = vmatprep.subr.mxu1 %v458_v24 }
 0x181   :  { %v933_v19 = vpop.f32.mrb[5].mxu0 }
 0x182   :  { %v934_v20 = vadd.f32 %v933_v19, %v932_v18  ;;  %v935_v21 = vpop.f32.mrb[6].mxu0 }
 0x183   :  { %v936_v22 = vpop.f32.mrb[7].mxu0 }
 0x184   :  { %v937_v23 = vadd.f32 %v936_v22, %v935_v21  ;;  %1023 = vmatprep.mubr.f32.mxu1 %v934_v20  ;;  %v805_v22 = vpop.permute.xlu1 %804 }
 0x186   :  { %1024 = vmatmul.mubr.f32.gmra.mrb[2].mxu1 %v937_v23 }
 0x251   :  { %v1022_v25 = vpop.f32.mrb[0].mxu1 }
 0x252   :  { %v435_v26 = vpop.f32.mrb[1].mxu1  ;;  %v455_v28 = vmul.f32 0.0625, %v1022_v25 }
 0x253   :  { %v454_v27 = vmul.f32 0.0625, %v435_v26 }
 0x255   :  { %1028 = vmatprep.mubr.msk.f32.mxu1 %vm459_vm3, %v454_v27 }
 0x256   :  { %1029 = vmatmul.mubr.msk.f32.vlgmr.msra.gmra.mrb[4].mxu1 %vm459_vm3, %v455_v28 }
 0x257   :  { %1073 = vmatpush3.msra.mxu1 %v458_v24 }
 0x259   :  { %v1025_v29 = vpop.f32.mrb[2].mxu1 }
 0x25a   :  { %v445_v30 = vpop.f32.mrb[3].mxu1  ;;  %v457_v32 = vmul.f32 0.0625, %v1025_v29 }
 0x25b   :  { %v456_v31 = vmul.f32 0.0625, %v445_v30 }
 0x25d   :  { %1031 = vmatprep.mubr.msk.f32.mxu1 %vm459_vm3, %v456_v31 }
 0x25e   :  { %1032 = vmatmul.mubr.msk.f32.gmra.mrb[6].mxu1 %vm459_vm3, %v457_v32  ;;  %v809_v32 = vpop.permute.xlu1 %808 }
 0x329   :  { %v1030_v38 = vpop.f32.mrb[4].mxu1 }
 0x32a   :  { %v558_v39 = vsub.f32 %v931_v17, %v1030_v38  ;;  %v538_v40 = vpop.f32.mrb[5].mxu1  ;;  %v801_v17 = vpop.permute.xlu0 %800 }
 0x32b   :  { %v557_v41 = vsub.f32 %v928_v14, %v538_v40 }
 0x32c   :  { %v562_v43 = vmul.f32 %v558_v39, %v558_v39 }
 0x32d   :  { %v561_v42 = vmul.f32 %v557_v41, %v557_v41 }
 0x32f   :  { %1066 = vmatprep.mubr.f32.mxu0 %v561_v42 }
 0x330   :  { %1067 = vmatmul.mubr.f32.vlgmr.msra.gmra.mrb[8].mxu0 %v562_v43 }
 0x331   :  { %v1033_v44 = vpop.f32.mrb[6].mxu1 }
 0x332   :  { %v1387_v45 = vsub.f32 %v937_v23, %v1033_v44  ;;  %v548_v46 = vpop.f32.mrb[7].mxu1 }
 0x333   :  { %v1389_v47 = vsub.f32 %v934_v20, %v548_v46 }
 0x334   :  { %v564_v49 = vmul.f32 %v1387_v45, %v1387_v45 }
 0x335   :  { %v563_v48 = vmul.f32 %v1389_v47, %v1389_v47 }
 0x337   :  { %1069 = vmatprep.mubr.f32.mxu0 %v563_v48 }
 0x338   :  { %1070 = vmatmul.mubr.f32.gmra.mrb[10].mxu0 %v564_v49 }
 0x403   :  { %v1068_v51 = vpop.f32.mrb[8].mxu0 }
 0x404   :  { %v651_v52 = vmul.f32 0.0625, %v1068_v51  ;;  %v631_v53 = vpop.f32.mrb[9].mxu0 }
 0x405   :  { %v650_v54 = vmul.f32 0.0625, %v631_v53 }
 0x406   :  { %v655_v55 = vmax.f32 %v651_v52, 0.0 }
 0x407   :  { %v654_v56 = vmax.f32 %v650_v54, 0.0 }
 0x408   :  { %v663_v57 = vadd.f32 1e-05, %v655_v55 }
 0x409   :  { %v662_v58 = vadd.f32 1e-05, %v654_v56 }
 0x40a   :  { %1175 = vrsqrt.f32 %v663_v57 }
 0x40b   :  { %1177 = vrsqrt.f32 %v662_v58  ;;  %v1071_v59 = vpop.f32.mrb[10].mxu0 }
 0x40c   :  { %v653_v60 = vmul.f32 0.0625, %v1071_v59  ;;  %v641_v61 = vpop.f32.mrb[11].mxu0 }
 0x40d   :  { %v652_v62 = vmul.f32 0.0625, %v641_v61 }
 0x40e   :  { %v657_v63 = vmax.f32 %v653_v60, 0.0 }
 0x40f   :  { %v656_v0 = vmax.f32 %v652_v62, 0.0 }
 0x410   :  { %v665_v1 = vadd.f32 1e-05, %v657_v63 }
 0x411   :  { %v664_v2 = vadd.f32 1e-05, %v656_v0 }
 0x412   :  { %1179 = vrsqrt.f32 %v665_v1 }
 0x413   :  { %1181 = vrsqrt.f32 %v664_v2 }
 0x414   :  { %v1176_v4 = vpop.eup %1175 }
 0x415   :  { %v1178_v6 = vpop.eup %1177  ;;  %v691_v8 = vmul.f32 %v1176_v4, %v678_v5 }
 0x416   :  { %v690_v7 = vmul.f32 %v1178_v6, %v673_v3 }
 0x418   :  { %1074 = vmatprep.mubr.msk.f32.mxu1 %vm459_vm3, %v690_v7 }
 0x419   :  { %1075 = vmatmul.mubr.msk.f32.vlgmr.msra.gmra.mrb[8].mxu1 %vm459_vm3, %v691_v8 }
 0x41c   :  { %v1180_v9 = vpop.eup %1179 }
 0x41d   :  { %v1182_v10 = vpop.eup %1181  ;;  %v693_v14 = vmul.f32 %v1180_v9, %v688_v13 }
 0x41e   :  { %v692_v12 = vmul.f32 %v1182_v10, %v683_v11 }
 0x420   :  { %1077 = vmatprep.mubr.msk.f32.mxu1 %vm459_vm3, %v692_v12 }
 0x421   :  { %1078 = vmatmul.mubr.msk.f32.gmra.mrb[10].mxu1 %vm459_vm3, %v693_v14 }
 0x4ec   :  { %v1076_v16 = vpop.f32.mrb[8].mxu1 }
 0x4ed   :  { %v792_v18 = vmul.f32 %v1076_v16, %v558_v39  ;;  %v772_v19 = vpop.f32.mrb[9].mxu1 }
 0x4ee   :  { %v791_v20 = vmul.f32 %v772_v19, %v557_v41 }
 0x4ef   :  { %v812_v21 = vadd.f32 %v801_v17, %v792_v18 }
 0x4f0   :  { %v811_v23 = vadd.f32 %v797_v15, %v791_v20 }
 0x4f1   :  { %vm816_vm4 = vcmp.ge.f32.partialorder %v812_v21, 0.0  ;;  %v820_v24 = vmul.f32 0.2, %v812_v21 }
 0x4f2   :  { %vm815_vm5 = vcmp.ge.f32.partialorder %v811_v23, 0.0  ;;  %v819_v25 = vmul.f32 0.2, %v811_v23 }
 0x4f3   :  { %v824_v26 = vsel %vm816_vm4, %v812_v21, %v820_v24 }
 0x4f4   :  { %v823_v27 = vsel %vm815_vm5, %v811_v23, %v819_v25  ;;  %v1079_v28 = vpop.f32.mrb[10].mxu1 }
 0x4f5   :  { %v902_v29 = vpack.c.bf16 %v824_v26, %v823_v27  ;;  %v794_v30 = vmul.f32 %v1079_v28, %v1387_v45  ;;  %v782_v31 = vpop.f32.mrb[11].mxu1 }
 0x4f6   :  { %v793_v33 = vmul.f32 %v782_v31, %v1389_v47 }
 0x4f7   :  { %903 = vst [vmem:[%s1412_s5] sm:$0xff] %v902_v29   ;;  %v814_v34 = vadd.f32 %v809_v32, %v794_v30 }
 0x4f8   :  { %v813_v35 = vadd.f32 %v805_v22, %v793_v33 }
 0x4f9   :  { %vm818_vm6 = vcmp.ge.f32.partialorder %v814_v34, 0.0  ;;  %v822_v36 = vmul.f32 0.2, %v814_v34 }
 0x4fa   :  { %vm817_vm7 = vcmp.ge.f32.partialorder %v813_v35, 0.0  ;;  %v821_v37 = vmul.f32 0.2, %v813_v35 }
 0x4fb   :  { %v826_v38 = vsel %vm818_vm6, %v814_v34, %v822_v36 }
 0x4fc   :  { %v825_v39 = vsel %vm817_vm7, %v813_v35, %v821_v37 }
 0x4fd   :  { %v907_v40 = vpack.c.bf16 %v826_v38, %v825_v39 }
 0x4ff   :  { %909 = vst [vmem:[%s1412_s5 + $0x8] sm:$0xff] %v907_v40  }

// kernel: discriminator_forward.7
= control target key start
LH: loop header
LB: loop body
LE: loop exit
PB: predicated region body
PF: predicated region fallthrough
CT: control target
= control target key end

     0   :  { %v108_v28 = vlaneseq  ;;  %v702_v35 = vmov 1966171168   ;;  %s876_s0 = inlined_call_operand.vmem [shape: bf16[2,512], index: 0, kind: input, shape index: {}]   ;;  %s877_s1 = inlined_call_operand.vmem [shape: bf16[512,64], index: 1, kind: input, shape index: {}]   ;;  %s878_s2 = inlined_call_operand.vmem [shape: f32[1,64], index: 2, kind: input, shape index: {}]   ;;  %s879_s3 = inlined_call_operand.vmem [shape: bf16[64,5], index: 3, kind: input, shape index: {}]   ;;  %s880_s4 = inlined_call_operand.vmem [shape: f32[1,5], index: 4, kind: input, shape index: {}]   ;;  %s881_s5 = inlined_call_operand.vmem [shape: f32[2,1], index: 5, kind: output, shape index: {0}]   ;;  %s882_s6 = inlined_call_operand.hbm [shape: f32[2,4], index: 6, kind: output, shape index: {1}]  }
   0x1   :  { %v638_v0 = vld [vmem:[%s877_s1 + $0x40] sm:$0xff]   ;;  %v642_v4 = vld [vmem:[%s877_s1 + $0x48] sm:$0xff]   ;;  %v646_v8 = vld [vmem:[%s877_s1 + $0x50] sm:$0xff]   ;;  %v106_v36 = vunpack.c.l.s4 %v702_v35 }
   0x2   :  { %v639_v1 = vld [vmem:[%s877_s1 + $0xc0] sm:$0xff]   ;;  %572 = vmatprep.subr.bf16.mxu0 %v638_v0  ;;  %v643_v5 = vld [vmem:[%s877_s1 + $0xc8] sm:$0xff]   ;;  %v647_v9 = vld [vmem:[%s877_s1 + $0xd0] sm:$0xff]   ;;  %v109_v33 = vshrl.u32 %v108_v28, 7 }
   0x3   :  { %v640_v2 = vld [vmem:[%s877_s1] sm:$0xff]   ;;  %594 = vmatprep.subr.bf16.mxu1 %v639_v1  ;;  %v644_v6 = vld [vmem:[%s877_s1 + $0x8] sm:$0xff]   ;;  %v648_v10 = vld [vmem:[%s877_s1 + $0x10] sm:$0xff]   ;;  %v107_v38 = vunpack.c.0.s8 %v106_v36 }
   0x4   :  { %v641_v3 = vld [vmem:[%s877_s1 + $0x80] sm:$0xff]   ;;  %573 = vmatpush3.bf16.msra.mxu0 %v640_v2  ;;  %v645_v7 = vld [vmem:[%s877_s1 + $0x88] sm:$0xff]   ;;  %v649_v11 = vld [vmem:[%s877_s1 + $0x90] sm:$0xff]  }
   0x5   :  { %595 = vmatpush3.bf16.msra.mxu1 %v641_v3  ;;  %574 = vmatprep.subr.bf16.mxu0 %v642_v4  ;;  %v650_v12 = vld [vmem:[%s877_s1 + $0x58] sm:$0xff]   ;;  %v654_v16 = vld [vmem:[%s877_s1 + $0x60] sm:$0xff]   ;;  %v658_v20 = vld [vmem:[%s877_s1 + $0x68] sm:$0xff]  }
   0x6   :  { %596 = vmatprep.subr.bf16.mxu1 %v643_v5  ;;  %v651_v13 = vld [vmem:[%s877_s1 + $0xd8] sm:$0xff]   ;;  %v655_v17 = vld [vmem:[%s877_s1 + $0xe0] sm:$0xff]   ;;  %v659_v21 = vld [vmem:[%s877_s1 + $0xe8] sm:$0xff]  }
   0x7   :  { %v652_v14 = vld [vmem:[%s877_s1 + $0x18] sm:$0xff]   ;;  %v656_v18 = vld [vmem:[%s877_s1 + $0x20] sm:$0xff]   ;;  %v660_v22 = vld [vmem:[%s877_s1 + $0x28] sm:$0xff]  }
   0x8   :  { %575 = vmatpush3.bf16.msra.mxu0 %v644_v6  ;;  %v653_v15 = vld [vmem:[%s877_s1 + $0x98] sm:$0xff]   ;;  %v657_v19 = vld [vmem:[%s877_s1 + $0xa0] sm:$0xff]   ;;  %v661_v23 = vld [vmem:[%s877_s1 + $0xa8] sm:$0xff]  }
   0x9   :  { %597 = vmatpush3.bf16.msra.mxu1 %v645_v7  ;;  %576 = vmatprep.subr.bf16.mxu0 %v646_v8  ;;  %v662_v24 = vld [vmem:[%s877_s1 + $0x70] sm:$0xff]   ;;  %v666_v29 = vld [vmem:[%s877_s1 + $0x78] sm:$0xff]   ;;  %v531_v34 = vld.sshfl [vmem:[%s876_s0] sm:$0x33 pattern:$0x75316420] }
   0xa   :  { %598 = vmatprep.subr.bf16.mxu1 %v647_v9  ;;  %v663_v25 = vld [vmem:[%s877_s1 + $0xf0] sm:$0xff]   ;;  %v667_v30 = vld [vmem:[%s877_s1 + $0xf8] sm:$0xff]   ;;  %v104_v37 = vcombine.high %v531_v34, %v531_v34 }
   0xb   :  { %v664_v26 = vld [vmem:[%s877_s1 + $0x30] sm:$0xff]   ;;  %v668_v31 = vld [vmem:[%s877_s1 + $0x38] sm:$0xff]  }
   0xc   :  { %577 = vmatpush3.bf16.msra.mxu0 %v648_v10  ;;  %v665_v27 = vld [vmem:[%s877_s1 + $0xb0] sm:$0xff]   ;;  %v669_v32 = vld [vmem:[%s877_s1 + $0xb8] sm:$0xff]  }
   0xd   :  { %599 = vmatpush3.bf16.msra.mxu1 %v649_v11  ;;  %578 = vmatprep.subr.bf16.mxu0 %v650_v12 }
   0xe   :  { %600 = vmatprep.subr.bf16.mxu1 %v651_v13 }
  0x10   :  { %579 = vmatpush3.bf16.msra.mxu0 %v652_v14 }
  0x11   :  { %601 = vmatpush3.bf16.msra.mxu1 %v653_v15  ;;  %580 = vmatprep.subr.bf16.mxu0 %v654_v16 }
  0x12   :  { %602 = vmatprep.subr.bf16.mxu1 %v655_v17 }
  0x14   :  { %581 = vmatpush3.bf16.msra.mxu0 %v656_v18 }
  0x15   :  { %603 = vmatpush3.bf16.msra.mxu1 %v657_v19  ;;  %582 = vmatprep.subr.bf16.mxu0 %v658_v20 }
  0x16   :  { %604 = vmatprep.subr.bf16.mxu1 %v659_v21 }
  0x18   :  { %583 = vmatpush3.bf16.msra.mxu0 %v660_v22 }
  0x19   :  { %605 = vmatpush3.bf16.msra.mxu1 %v661_v23  ;;  %584 = vmatprep.subr.bf16.mxu0 %v662_v24 }
  0x1a   :  { %606 = vmatprep.subr.bf16.mxu1 %v663_v25 }
  0x1c   :  { %585 = vmatpush3.bf16.msra.mxu0 %v664_v26 }
  0x1d   :  { %607 = vmatpush3.bf16.msra.mxu1 %v665_v27  ;;  %586 = vmatprep.subr.bf16.mxu0 %v666_v29 }
  0x1e   :  { %608 = vmatprep.subr.bf16.mxu1 %v667_v30 }
  0x20   :  { %587 = vmatpush3.bf16.msra.mxu0 %v668_v31 }
  0x21   :  { %609 = vmatpush3.bf16.msra.mxu1 %v669_v32 }
  0x22   :  { %12 = vsyncpa [#allocation4], 0  ;;  %v110_v39 = vsub.s32 %v107_v38, %v109_v33  ;;  %vm28_vm0 = vcmask 517120   ;;  %v703_v44 = vmov 0.0   ;;  %v670_v45 = vld [vmem:[%s879_s3] sm:$0xff]   ;;  %v671_v46 = vld [vmem:[%s879_s3 + $0x8] sm:$0xff]  }
  0x23   :  { %29 = vst.msk [vmem:[#allocation2] sm:$0x3] %vm28_vm0, %v703_v44  ;;  %621 = vmatprep.subr.bf16.mxu0 %v703_v44  ;;  %vm704_vm1 = vmmov 0   ;;  %v672_v47 = vld [vmem:[%s879_s3 + $0x10] sm:$0xff]   ;;  %v673_v48 = vld [vmem:[%s879_s3 + $0x18] sm:$0xff]   ;;  %vm455_vm3 = vcmask 523264  }
  0x24   :  { %v118_v40 = vrot.slane %v104_v37, %v110_v39  ;;  %v111_v41 = vrot.slane %v531_v34, %v110_v39  ;;  %v564_v62 = vld [vmem:[%s878_s2] ss:$0 sm:$0xff]  ;;  %vm499_vm4 = vcmask 1024   ;;  %s705_s2 = smov 127   ;;  %s706_s26 = smov [#allocation3]   ;;  %vm511_vm5 = vcmask 25600  }
  0x25   :  { %v565_v4 = vld [vmem:[%s880_s4] ss:$0 sm:$0xff]  ;;  %s521_s4 = sshll.u32 %s706_s26, 4  ;;  %s522_s4 = int_to_ptr.vmem [resolvable:$true] %s521_s4 }
  0x26   :  { %349 = vmatprep.mubr.bf16.mxu0 %v118_v40  ;;  %v120_v42 = vcombine.high %v118_v40, %v118_v40  ;;  %v119_v43 = vcombine.high %v111_v41, %v111_v41  ;;  %s678_s27 = scalar_lea.vmem %s522_s4, 32  ;;  %p683_p1 = scmp.lt.s32.totalorder %s522_s4, %s522_s4 }
  0x27   :  { %350 = vmatmul.mubr.bf16.vlgmr.msra.gmra.mrb[0].mxu0 %v111_v41  ;;  %p679_p0 = scmp.ne.s32.totalorder %s522_s4, %s678_s27  ;;  %p684_p2 = scmp.lt.s32.totalorder %s678_s27, %s678_s27 }
  0x28   :  { %389 = vmatprep.mubr.bf16.mxu1 %v120_v42  ;;  %622 = vmatpush3.bf16.msra.mxu0 %v670_v45 }
  0x29   :  { %390 = vmatmul.mubr.bf16.vlgmr.msra.gmra.mrb[0].mxu1 %v119_v43  ;;  %623 = vmatprep.subr.bf16.mxu0 %v703_v44  ;;  %p685_p3 = por %p684_p2, %p683_p1 }
  0x2a   :  { %629 = vmatprep.mubr.msk.bf16.mxu0 %vm704_vm1, %v703_v44  ;;  %v30_v58 = vld [vmem:[#allocation2] sm:$0x3] }
  0x2b   :  { %p686_p4 = pnand %p685_p3, %p679_p0 }
  0x2c   :  { %624 = vmatpush3.bf16.msra.mxu0 %v671_v46 }
  0x2d   :  { %625 = vmatprep.subr.bf16.mxu0 %v703_v44 }
  0x30   :  { %626 = vmatpush3.bf16.msra.mxu0 %v672_v47 }
  0x31   :  { %627 = vmatprep.subr.bf16.mxu0 %v703_v44 }
  0x34   :  { %628 = vmatpush3.bf16.msra.mxu0 %v673_v48 }
  0xfa   :  { %v588_v49 = vpop.f32.mrb[0].mxu0 }
  0xfb   :  { %v589_v50 = vpop.f32.mrb[1].mxu0 }
  0xfc   :  { %v610_v51 = vpop.f32.mrb[0].mxu1  ;;  %v590_v52 = vadd.f32 %v589_v50, %v588_v49  ;;  %v591_v53 = vpop.f32.mrb[2].mxu0 }
  0xfd   :  { %v611_v54 = vpop.f32.mrb[1].mxu1  ;;  %v592_v55 = vpop.f32.mrb[3].mxu0 }
  0xfe   :  { %v612_v56 = vadd.f32 %v611_v54, %v610_v51  ;;  %v613_v57 = vpop.f32.mrb[2].mxu1 }
  0xff   :  { %v614_v59 = vpop.f32.mrb[3].mxu1 }
 0x100   :  { %v392_v60 = vadd.f32 %v612_v56, %v590_v52 }
 0x102   :  { %v397_v61 = vadd.f32 %v392_v60, %v30_v58 }
 0x104   :  { %399 = vst.msk [vmem:[#allocation2] sm:$0x3] %vm28_vm0, %v397_v61 }
 0x10b   :  { %v403_v63 = vld [vmem:[#allocation2] sm:$0x3] }
 0x10c   :  { %v411_v0 = vadd.f32 %v564_v62, %v403_v63 }
 0x10e   :  { %vm412_vm2 = vcmp.ge.f32.partialorder %v411_v0, 0.0  ;;  %v413_v1 = vmul.f32 0.2, %v411_v0 }
 0x110   :  { %v414_v2 = vsel %vm412_vm2, %v411_v0, %v413_v1 }
 0x111   :  { %v415_v3 = vpack.c.bf16 %v414_v2, %v414_v2 }
 0x113   :  { %630 = vmatmul.mubr.msk.bf16.vlgmr.msra.gmra.mrb[4].mxu0 %vm455_vm3, %v415_v3 }
 0x1e6   :  { %v493_v5 = vpop.f32.mrb[4].mxu0 }
 0x1e7   :  { %v494_v6 = vadd.f32 %v565_v4, %v493_v5  ;;  %v631_v7 = vpop.f32.mrb[5].mxu0 }
 0x1e8   :  { %v496_v8 = vpop.f32.mrb[6].mxu0 }
 0x1e9   :  { %500 = vst.msk [vmem:[%s881_s5] sm:$0x3] %vm499_vm4, %v494_v6  ;;  %v571_v9 = vmul.f32 -1.442695, %v494_v6  ;;  %v632_v10 = vpop.f32.mrb[7].mxu0 }
 0x1eb   :  { %674 = vpow2.f32 %v571_v9 }
 0x1f5   :  { %v675_v11 = vpop.eup %674 }
 0x1f6   :  { %v504_v12 = vadd.f32 1.0, %v675_v11 }
 0x1f8   :  { %676 = vrcp.f32 %v504_v12 }
 0x202   :  { %v677_v13 = vpop.eup %676 }
 0x203   :  { %508 = vrot.lane.b32.xlu0 %v677_v13, %s705_s2 }
 0x275   :  { %v509_v14 = vpop.permute.xlu0 %508 }
 0x276   :  { %512 = vst.msk [vmem:[#allocation3] sm:$0x3] %vm511_vm5, %v509_v14 }
 0x277   :  { %689 = shalt.err (!%p686_p4)
}
 0x278   :  { %s690_s29 = scalar_lea.hbm %s882_s6, 32 }
 0x279   :  { %p691_p5 = scmp.ne.s32.totalorder %s882_s6, %s690_s29  ;;  %p694_p6 = scmp.lt.u32.totalorder %s690_s29, %s882_s6 }
 0x27b   :  { %p696_p7 = pnand %p694_p6, %p691_p5 }
 0x27d   :  { %699 = shalt.err (!%p696_p7)
}
 0x27e   :  { %524 = dma.vmem_to_hbm [thread:$0]  %s522_s4, 32, %s882_s6, [#allocation4]  }
 0x27f   :  { %700 = dma.done.wait [#allocation4], 32  }
 0x280   :  { %701 = vsyncadd [#allocation4], 4294967264 }
 0x281   :  { %530 = vsyncpa [#allocation4], 1 }

</bundles_post_ra>
